<compile_context>
chip_gen: v7x
topology: tpu7x:2x2x1
jax: 0.10.0
libtpu: 0.0.40
codegen_flags: <defaults>
</compile_context>

<pallas_src>
import functools
from math import sqrt

import jax
import jax.numpy as jnp
from jax.experimental import pallas as pl
from jax.experimental.pallas import tpu as pltpu


def _sae_kernel(x_ref, weT_ref, be_ref, thr_ref, wdT_ref, bd_ref,
                acts_ref, xhat_ref, *scratch, tile_f, resident_weights):
    # x_ref:    (tT, D)  MXU-operand dtype (bf16 by default)
    # weT_ref:  (D, tF)  streamed   | (D, F)  when resident_weights
    # be_ref:   (1, tF) f32         | thr_ref: (1, tF) f32  (= exp(t))
    # wdT_ref:  (tF, D)  streamed   | (F, D)  when resident_weights
    # bd_ref:   (1, D)  f32
    # acts_ref: (tT, tF) out dtype  | xhat_ref: (tT, D) out dtype (resident over f)
    # scratch:  optional (tT, D) f32 accumulator (only for non-f32 outputs)
    f = pl.program_id(1)
    nf = pl.num_programs(1)
    acc_ref = scratch[0] if scratch else xhat_ref   # P3: acc into output when f32

    if resident_weights:
        off = pl.multiple_of(f * tile_f, tile_f)
        we_tile = weT_ref[:, pl.ds(off, tile_f)]
        wd_tile = wdT_ref[pl.ds(off, tile_f), :]
    else:
        we_tile = weT_ref[...]
        wd_tile = wdT_ref[...]

    # --- encode tile: pre = x @ w_e.T[:, f-tile] + b_e  (bf16 MXU, f32 acc) ---
    pre = jnp.dot(x_ref[...], we_tile, preferred_element_type=jnp.float32)
    pre = pre + be_ref[...]

    # JumpReLU forward: x * (x > exp(t)), compare/select in f32 on the VPU.
    acts_f32 = jnp.where(pre > thr_ref[...], pre, 0.0)
    acts_ref[...] = acts_f32.astype(acts_ref.dtype)

    # --- decode: accumulate acts @ w_d.T[f-tile, :] over the F grid axis ---
    @pl.when(f == 0)
    def _init():
        acc_ref[...] = jnp.zeros_like(acc_ref)

    acc_ref[...] += jnp.dot(acts_f32.astype(wd_tile.dtype), wd_tile,
                            preferred_element_type=jnp.float32)

    @pl.when(f == nf - 1)
    def _finalize():
        xhat_ref[...] = (acc_ref[...].astype(jnp.float32)
                         + bd_ref[...]).astype(xhat_ref.dtype)


def _vmem_capacity_bytes():
    try:
        return int(pltpu.get_tpu_info().vmem_capacity_bytes)
    except Exception:
        return 64 * 1024 * 1024       # conservative: v7x has 64 MiB per TensorCore


def sae_forward(x, w_e, b_e, w_d, b_d, t, *, tile_t=256, tile_f=512,
                mxu_dtype=jnp.bfloat16):
    """x: (T, D); w_e: (F, D); b_e: (F,); w_d: (D, F); b_d: (D,); t: (F,)."""
    T, D = x.shape
    F = w_e.shape[0]
    out_dtype = x.dtype
    op_dtype = jnp.dtype(mxu_dtype) if mxu_dtype is not None else jnp.dtype(x.dtype)

    tile_t = min(tile_t, T)
    tile_f = min(tile_f, F)
    assert T % tile_t == 0, "T must be a multiple of tile_t"
    assert F % tile_f == 0, "F must be a multiple of tile_f"
    assert D % 128 == 0 and tile_f % 128 == 0 and tile_t % 8 == 0, \
        "D and tile_f must be multiples of 128; tile_t a multiple of 8"

    # --- layout plumbing in the wrapper (free at kernel time) ----------------
    x_op = x.astype(op_dtype)
    w_eT = jnp.asarray(w_e).T.astype(op_dtype)                  # (D, F)
    w_dT = jnp.asarray(w_d).T.astype(op_dtype)                  # (F, D)
    thr = jnp.exp(t.astype(jnp.float32)).reshape(1, F)          # exp(t) once
    b_e2 = b_e.astype(jnp.float32).reshape(1, F)
    b_d2 = b_d.astype(jnp.float32).reshape(1, D)

    op_sz = op_dtype.itemsize
    out_sz = jnp.dtype(out_dtype).itemsize
    vmem_cap = _vmem_capacity_bytes()

    # Keep both weight matrices fully VMEM-resident (fetched once instead of
    # once per token tile) whenever the double-buffered footprint is modest.
    weight_bytes = 2 * D * F * op_sz
    resident_weights = 2 * weight_bytes <= int(0.5 * vmem_cap)

    if resident_weights:
        we_spec = pl.BlockSpec((D, F), lambda i, f: (0, 0))
        wd_spec = pl.BlockSpec((F, D), lambda i, f: (0, 0))
        weight_vmem = 2 * weight_bytes
        weight_hbm = weight_bytes                      # fetched once
    else:
        we_spec = pl.BlockSpec((D, tile_f), lambda i, f: (0, f))
        wd_spec = pl.BlockSpec((tile_f, D), lambda i, f: (f, 0))
        weight_vmem = 2 * (2 * D * tile_f * op_sz)
        weight_hbm = (T // tile_t) * weight_bytes      # re-streamed per token tile

    # f32 output -> accumulate directly into the resident x_hat block (no
    # scratch); narrower output dtypes get a dedicated f32 accumulator.
    use_scratch = jnp.dtype(out_dtype) != jnp.dtype(jnp.float32)
    scratch_shapes = [pltpu.VMEM((tile_t, D), jnp.float32)] if use_scratch else []

    # --- explicit VMEM budget (default scoped limit is only 16-32 MiB) -------
    needed = (2 * tile_t * D * op_sz              # x block (double buffered)
              + weight_vmem                       # weights
              + 2 * 2 * tile_f * 4 + 2 * D * 4    # b_e, exp(t), b_d
              + 2 * tile_t * tile_f * out_sz      # acts out block
              + 2 * tile_t * D * out_sz           # x_hat out block
              + (tile_t * D * 4 if use_scratch else 0))
    vmem_limit = min(max(int(needed * 1.25) + (4 << 20), 32 << 20),
                     int(0.85 * vmem_cap))

    grid = (T // tile_t, F // tile_f)

    cost = pl.CostEstimate(
        flops=4 * T * F * D,                       # encode + decode matmuls
        transcendentals=0,
        bytes_accessed=int(T * D * op_sz + weight_hbm + (2 * F + D) * 4
                           + T * F * out_sz + T * D * out_sz),
    )

    kernel = functools.partial(_sae_kernel, tile_f=tile_f,
                               resident_weights=resident_weights)

    acts, x_hat = pl.pallas_call(
        kernel,
        out_shape=(
            jax.ShapeDtypeStruct((T, F), out_dtype),
            jax.ShapeDtypeStruct((T, D), out_dtype),
        ),
        grid_spec=pltpu.PrefetchScalarGridSpec(
            num_scalar_prefetch=0,
            grid=grid,
            in_specs=[
                pl.BlockSpec((tile_t, D), lambda i, f: (i, 0)),    # x (resident over f)
                we_spec,                                           # w_e.T
                pl.BlockSpec((1, tile_f), lambda i, f: (0, f)),    # b_e tile
                pl.BlockSpec((1, tile_f), lambda i, f: (0, f)),    # exp(t) tile
                wd_spec,                                           # w_d.T
                pl.BlockSpec((1, D), lambda i, f: (0, 0)),         # b_d (resident)
            ],
            out_specs=(
                pl.BlockSpec((tile_t, tile_f), lambda i, f: (i, f)),   # acts
                pl.BlockSpec((tile_t, D), lambda i, f: (i, 0)),        # x_hat (acc over f)
            ),
            scratch_shapes=scratch_shapes,
        ),
        compiler_params=pltpu.CompilerParams(
            dimension_semantics=("parallel", "arbitrary"),
            vmem_limit_bytes=vmem_limit,
        ),
        cost_estimate=cost,
    )(x_op, w_eT, b_e2, thr, w_dT, b_d2)
    return acts, x_hat


def init_sae_params(key, d_model, n_features, threshold):
    # Mirrors the PyTorch __init__:
    #   w_d ~ U(-1/sqrt(d_model), 1/sqrt(d_model)), shape (d_model, n_features)
    #   w_e = (d_model / n_features) * w_d.T,        shape (n_features, d_model)
    #   b_d = zeros(d_model); b_e uninitialized -> deterministically zeros here
    #   t   = full(n_features, threshold)
    k_wd, _ = jax.random.split(key)
    bound = 1.0 / sqrt(d_model)
    w_d = jax.random.uniform(
        k_wd, (d_model, n_features), minval=-bound, maxval=bound, dtype=jnp.float32
    )
    w_e = (d_model / n_features) * w_d.T
    b_d = jnp.zeros((d_model,), jnp.float32)
    b_e = jnp.zeros((n_features,), jnp.float32)
    t = jnp.full((n_features,), threshold, jnp.float32)
    return w_e, b_e, w_d, b_d, t


def _mostly_close(a, b, atol=2e-3, rtol=2e-2, max_bad_frac=5e-3):
    # Robust check: bf16 MXU vs. reference; tolerates a (vanishingly rare)
    # JumpReLU boundary flip from accumulation-order differences.
    bad = jnp.abs(a.astype(jnp.float32) - b) > (atol + rtol * jnp.abs(b))
    return float(jnp.mean(bad.astype(jnp.float32))) <= max_bad_frac


if __name__ == "__main__":
    d_model = 256            # D (multiple of 128 -> lane-dense x_hat tiles)
    n_features = 512         # F
    T = 512                  # tokens: T/tile_t = 2 keeps both v7x TCs busy
    threshold = -1.0         # gate at exp(-1) so acts are non-trivially sparse
    bandwidth = 0.001        # only used by the backward; forward ignores it

    key = jax.random.PRNGKey(0)
    k_x, k_p = jax.random.split(key)
    x = jax.random.normal(k_x, (T, d_model), dtype=jnp.float32)
    w_e, b_e, w_d, b_d, t = init_sae_params(k_p, d_model, n_features, threshold)

    acts, x_hat = sae_forward(x, w_e, b_e, w_d, b_d, t, tile_t=256, tile_f=256)
    jax.block_until_ready((acts, x_hat))

    # Reference in plain JAX mirroring the kernel's bf16-operand / f32-accum path.
    xb = x.astype(jnp.bfloat16)
    web = w_e.astype(jnp.bfloat16)
    wdb = w_d.astype(jnp.bfloat16)
    pre_ref = jnp.dot(xb, web.T, preferred_element_type=jnp.float32) + b_e
    acts_ref = jnp.where(pre_ref > jnp.exp(t), pre_ref, 0.0)
    xhat_ref = jnp.dot(acts_ref.astype(jnp.bfloat16), wdb.T,
                       preferred_element_type=jnp.float32) + b_d

    assert acts.shape == (T, n_features) and x_hat.shape == (T, d_model)
    assert _mostly_close(acts, acts_ref), "acts mismatch"
    assert _mostly_close(x_hat, xhat_ref), "x_hat mismatch"

    print("KERNEL_OK")
</pallas_src>

<mosaic_0001>
module attributes {stable_mosaic.version = 11 : i64} {
  func.func @_sae_kernel(%arg0: i32, %arg1: i32, %arg2: memref<256x256xbf16, #tpu.memory_space<vmem>>, %arg3: memref<256x512xbf16, #tpu.memory_space<vmem>>, %arg4: memref<1x256xf32, #tpu.memory_space<vmem>>, %arg5: memref<1x256xf32, #tpu.memory_space<vmem>>, %arg6: memref<512x256xbf16, #tpu.memory_space<vmem>>, %arg7: memref<1x256xf32, #tpu.memory_space<vmem>>, %arg8: memref<256x256xf32, #tpu.memory_space<vmem>>, %arg9: memref<256x256xf32, #tpu.memory_space<vmem>>) attributes {dimension_semantics = [#tpu.dimension_semantics<parallel>, #tpu.dimension_semantics<arbitrary>], iteration_bounds = array<i64: 2, 2>, scalar_prefetch = 0 : i64, scratch_operands = 0 : i64, tpu.core_type = #tpu.core_type<tc>, window_params = [{transform_indices = @transform_0, window_bounds = array<i64: 256, 256>}, {pipeline_mode = #tpu.pipeline_mode<synchronous>, transform_indices = @transform_1, window_bounds = array<i64: 256, 512>}, {transform_indices = @transform_2, window_bounds = array<i64: 1, 256>}, {transform_indices = @transform_3, window_bounds = array<i64: 1, 256>}, {pipeline_mode = #tpu.pipeline_mode<synchronous>, transform_indices = @transform_4, window_bounds = array<i64: 512, 256>}, {pipeline_mode = #tpu.pipeline_mode<synchronous>, transform_indices = @transform_5, window_bounds = array<i64: 1, 256>}, {transform_indices = @transform_6, window_bounds = array<i64: 256, 256>}, {transform_indices = @transform_7, window_bounds = array<i64: 256, 256>}]} {
    %c256_i32 = arith.constant 256 : i32
    %0 = arith.muli %arg1, %c256_i32 : i32
    %1 = tpu.assume_multiple %0, 256 : i32
    %c0 = arith.constant 0 : index
    %2 = arith.index_cast %1 : i32 to index
    %3 = vector.load %arg3[%c0, %2] : memref<256x512xbf16, #tpu.memory_space<vmem>>, vector<256x256xbf16>
    %4 = arith.index_cast %1 : i32 to index
    %c0_0 = arith.constant 0 : index
    %5 = vector.load %arg6[%4, %c0_0] : memref<512x256xbf16, #tpu.memory_space<vmem>>, vector<256x256xbf16>
    %c0_1 = arith.constant 0 : index
    %c0_2 = arith.constant 0 : index
    %6 = vector.load %arg2[%c0_1, %c0_2] : memref<256x256xbf16, #tpu.memory_space<vmem>>, vector<256x256xbf16>
    %cst = arith.constant dense<0.000000e+00> : vector<256x256xf32>
    %7 = tpu.matmul %6, %3, %cst {dimension_numbers = #tpu.dot_dimension_numbers<[1], [0], [0], [1], [0, 0, 1, 1], [], []>} : vector<256x256xbf16>, vector<256x256xbf16>, vector<256x256xf32> -> vector<256x256xf32>
    %c0_3 = arith.constant 0 : index
    %c0_4 = arith.constant 0 : index
    %8 = vector.load %arg4[%c0_3, %c0_4] : memref<1x256xf32, #tpu.memory_space<vmem>>, vector<1x256xf32>
    %9 = vector.broadcast %8 : vector<1x256xf32> to vector<256x256xf32>
    %10 = arith.addf %7, %9 : vector<256x256xf32>
    %c0_5 = arith.constant 0 : index
    %c0_6 = arith.constant 0 : index
    %11 = vector.load %arg5[%c0_5, %c0_6] : memref<1x256xf32, #tpu.memory_space<vmem>>, vector<1x256xf32>
    %12 = vector.broadcast %11 : vector<1x256xf32> to vector<256x256xf32>
    %13 = arith.cmpf ogt, %10, %12 : vector<256x256xf32>
    %cst_7 = arith.constant 0.000000e+00 : f32
    %14 = vector.broadcast %cst_7 : f32 to vector<256x256xf32>
    %15 = arith.select %13, %10, %14 : vector<256x256xi1>, vector<256x256xf32>
    %c0_8 = arith.constant 0 : index
    %c0_9 = arith.constant 0 : index
    %16 = vector.load %arg8[%c0_8, %c0_9] : memref<256x256xf32, #tpu.memory_space<vmem>>, vector<256x256xf32>
    tpu.vector_store %arg8[%c0_8, %c0_9], %15 {strides = array<i32>} : memref<256x256xf32, #tpu.memory_space<vmem>>, vector<256x256xf32>,
    %c0_i32 = arith.constant 0 : i32
    %17 = arith.cmpi eq, %arg1, %c0_i32 : i32
    %18 = arith.extui %17 : i1 to i32
    %c0_i32_10 = arith.constant 0 : i32
    %19 = arith.cmpi ne, %18, %c0_i32_10 : i32
    scf.if %19 {
      %cst_17 = arith.constant 0.000000e+00 : f32
      %28 = vector.broadcast %cst_17 : f32 to vector<256x256xf32>
      %c0_18 = arith.constant 0 : index
      %c0_19 = arith.constant 0 : index
      %29 = vector.load %arg9[%c0_18, %c0_19] : memref<256x256xf32, #tpu.memory_space<vmem>>, vector<256x256xf32>
      tpu.vector_store %arg9[%c0_18, %c0_19], %28 {strides = array<i32>} : memref<256x256xf32, #tpu.memory_space<vmem>>, vector<256x256xf32>,
    } else {
    }
    %c0_11 = arith.constant 0 : index
    %c0_12 = arith.constant 0 : index
    %20 = vector.load %arg9[%c0_11, %c0_12] : memref<256x256xf32, #tpu.memory_space<vmem>>, vector<256x256xf32>
    %21 = arith.truncf %15 : vector<256x256xf32> to vector<256x256xbf16>
    %cst_13 = arith.constant dense<0.000000e+00> : vector<256x256xf32>
    %22 = tpu.matmul %21, %5, %cst_13 {dimension_numbers = #tpu.dot_dimension_numbers<[1], [0], [0], [1], [0, 0, 1, 1], [], []>} : vector<256x256xbf16>, vector<256x256xbf16>, vector<256x256xf32> -> vector<256x256xf32>
    %23 = arith.addf %20, %22 : vector<256x256xf32>
    %c0_14 = arith.constant 0 : index
    %c0_15 = arith.constant 0 : index
    %24 = vector.load %arg9[%c0_14, %c0_15] : memref<256x256xf32, #tpu.memory_space<vmem>>, vector<256x256xf32>
    tpu.vector_store %arg9[%c0_14, %c0_15], %23 {strides = array<i32>} : memref<256x256xf32, #tpu.memory_space<vmem>>, vector<256x256xf32>,
    %c1_i32 = arith.constant 1 : i32
    %25 = arith.cmpi eq, %arg1, %c1_i32 : i32
    %26 = arith.extui %25 : i1 to i32
    %c0_i32_16 = arith.constant 0 : i32
    %27 = arith.cmpi ne, %26, %c0_i32_16 : i32
    scf.if %27 {
      %c0_17 = arith.constant 0 : index
      %c0_18 = arith.constant 0 : index
      %28 = vector.load %arg9[%c0_17, %c0_18] : memref<256x256xf32, #tpu.memory_space<vmem>>, vector<256x256xf32>
      %c0_19 = arith.constant 0 : index
      %c0_20 = arith.constant 0 : index
      %29 = vector.load %arg7[%c0_19, %c0_20] : memref<1x256xf32, #tpu.memory_space<vmem>>, vector<1x256xf32>
      %30 = vector.broadcast %29 : vector<1x256xf32> to vector<256x256xf32>
      %31 = arith.addf %28, %30 : vector<256x256xf32>
      %c0_21 = arith.constant 0 : index
      %c0_22 = arith.constant 0 : index
      %32 = vector.load %arg9[%c0_21, %c0_22] : memref<256x256xf32, #tpu.memory_space<vmem>>, vector<256x256xf32>
      tpu.vector_store %arg9[%c0_21, %c0_22], %31 {strides = array<i32>} : memref<256x256xf32, #tpu.memory_space<vmem>>, vector<256x256xf32>,
    } else {
    }
    return
  }
  func.func @transform_0(%arg0: i32, %arg1: i32) -> (i32, i32) {
    %c0_i32 = arith.constant 0 : i32
    %c0_i32_0 = arith.constant 0 : i32
    return %arg0, %c0_i32 : i32, i32
  }
  func.func @transform_1(%arg0: i32, %arg1: i32) -> (i32, i32) {
    %c0_i32 = arith.constant 0 : i32
    %c0_i32_0 = arith.constant 0 : i32
    %c0_i32_1 = arith.constant 0 : i32
    return %c0_i32, %c0_i32_0 : i32, i32
  }
  func.func @transform_2(%arg0: i32, %arg1: i32) -> (i32, i32) {
    %c0_i32 = arith.constant 0 : i32
    %c0_i32_0 = arith.constant 0 : i32
    return %c0_i32, %arg1 : i32, i32
  }
  func.func @transform_3(%arg0: i32, %arg1: i32) -> (i32, i32) {
    %c0_i32 = arith.constant 0 : i32
    %c0_i32_0 = arith.constant 0 : i32
    return %c0_i32, %arg1 : i32, i32
  }
  func.func @transform_4(%arg0: i32, %arg1: i32) -> (i32, i32) {
    %c0_i32 = arith.constant 0 : i32
    %c0_i32_0 = arith.constant 0 : i32
    %c0_i32_1 = arith.constant 0 : i32
    return %c0_i32, %c0_i32_0 : i32, i32
  }
  func.func @transform_5(%arg0: i32, %arg1: i32) -> (i32, i32) {
    %c0_i32 = arith.constant 0 : i32
    %c0_i32_0 = arith.constant 0 : i32
    %c0_i32_1 = arith.constant 0 : i32
    return %c0_i32, %c0_i32_0 : i32, i32
  }
  func.func @transform_6(%arg0: i32, %arg1: i32) -> (i32, i32) {
    %c0_i32 = arith.constant 0 : i32
    return %arg0, %arg1 : i32, i32
  }
  func.func @transform_7(%arg0: i32, %arg1: i32) -> (i32, i32) {
    %c0_i32 = arith.constant 0 : i32
    %c0_i32_0 = arith.constant 0 : i32
    return %arg0, %c0_i32 : i32, i32
  }
}

</mosaic_0001>

<bundles_post_ra>
// kernel: tpu_custom_call.1
= control target key start
LH: loop header
LB: loop body
LE: loop exit
PB: predicated region body
PF: predicated region fallthrough
CT: control target
= control target key end

     0   :  { %s5037_s0 = inlined_call_operand.hbm [shape: bf16[512,256], index: 0, kind: input, shape index: {}]   ;;  %s5038_s1 = inlined_call_operand.hbm [shape: bf16[256,512], index: 1, kind: input, shape index: {}]   ;;  %s5039_s2 = inlined_call_operand.vmem [shape: f32[1,512], index: 2, kind: input, shape index: {}]   ;;  %s5040_s3 = inlined_call_operand.vmem [shape: f32[1,512], index: 3, kind: input, shape index: {}]   ;;  %s5041_s4 = inlined_call_operand.hbm [shape: bf16[512,256], index: 4, kind: input, shape index: {}]   ;;  %s5042_s5 = inlined_call_operand.vmem [shape: f32[1,256], index: 5, kind: input, shape index: {}]   ;;  %s5043_s6 = inlined_call_operand.hbm [shape: f32[512,512], index: 6, kind: output, shape index: {0}]   ;;  %s5044_s7 = inlined_call_operand.hbm [shape: f32[512,256], index: 7, kind: output, shape index: {1}]  }
   0x1   :  { %5195 = sst [smem:[#allocation65_spill]] %s5037_s0 }
   0x2   :  { %5196 = sst [smem:[#allocation66_spill]] %s5038_s1 }
   0x3   :  { %5197 = sst [smem:[#allocation67_spill]] %s5041_s4 }
   0x4   :  { %5198 = sst [smem:[#allocation68_spill]] %s5042_s5 }
   0x5   :  { %5199 = sst [smem:[#allocation69_spill]] %s5043_s6 }
   0x6   :  { %5200 = sst [smem:[#allocation70_spill]] %s5044_s7 }
   0x7   :  { %13 = vsyncpa [#allocation3], 0 }
   0x8   :  { %15 = vsyncpa [#allocation3 + $0x1], 0 }
   0x9   :  { %16 = vsyncpa [#allocation6], 0 }
   0xa   :  { %17 = vsyncpa [#allocation4], 0 }
   0xb   :  { %19 = vsyncpa [#allocation4 + $0x1], 0 }
   0xc   :  { %20 = vsyncpa [#allocation10], 0 }
   0xd   :  { %22 = vsyncpa [#allocation10 + $0x1], 0  ;;  %s3045_s24 = smov 0   ;;  %s3047_s25 = smov 0  }
   0xe   :  { %s3049_s26 = smov 0   ;;  %s3051_s27 = smov 0  }
   0xf   :  { %s3053_s28 = smov 0   ;;  %s3055_s29 = smov 0  }
  0x10   :  { %s3057_s30 = smov 0   ;;  %s3059_s8 = smov 0  }
  0x11   :  { %s3061_s9 = smov 0   ;;  %s3063_s10 = smov 0  }
  0x12   :  { %s3065_s11 = smov 0  }
  0x13 LB: > { %5201 = sst [smem:[#allocation15_spill]] %s2950_s24  ;;  %s2281_s12 = sadd.s32 4294967295, %s2990_s11   ;;  %s2990_s11 = sphi %s3065_s11, %s28_s11   ;;  %s2986_s10 = sphi %s3063_s10, %s5386_s10   ;;  %s2982_s9 = sphi %s3061_s9, %s5385_s9   ;;  %s2978_s8 = sphi %s3059_s8, %s5384_s8   ;;  %s2974_s30 = sphi %s3057_s30, %s5383_s30   ;;  %s2970_s29 = sphi %s3055_s29, %s5382_s29   ;;  %s2966_s28 = sphi %s3053_s28, %s5381_s28   ;;  %s2962_s27 = sphi %s3051_s27, %s5380_s27   ;;  %s2958_s26 = sphi %s3049_s26, %s5379_s26   ;;  %s2954_s25 = sphi %s3047_s25, %s5378_s25   ;;  %s2950_s24 = sphi %s3045_s24, %s5377_s24  }
  0x14   : > { %5202 = sst [smem:[#allocation16_spill]] %s2962_s27  ;;  %s2282_s13 = sadd.s32 4294967294, %s2990_s11  }
  0x15   : > { %5203 = sst [smem:[#allocation17_spill]] %s2978_s8  ;;  %p60_p0 = scmp.ne.s32.totalorder %s2966_s28, %s2962_s27 }
  0x16   : > { %p3104_p1 = scmp.eq.s32.totalorder %s2281_s12, 0  ;;  %p200_p2 = scmp.ne.s32.totalorder %s2958_s26, %s2954_s25 }
  0x17   : > { %p3117_p4 = scmp.eq.s32.totalorder %s2281_s12, 3  ;;  %p206_p5 = scmp.ne.s32.totalorder %s2954_s25, %s2950_s24 }
  0x18   : > { %s5204_s14 = scalar_select %p3104_p1, 1, 0 }
  0x19   : > { %p3113_p3 = por %p3104_p1, %p60_p0  ;;  %p207_p6 = scmp.eq.s32.totalorder %s2282_s13, 3 }
  0x1a   : > { %s5206_s17 = scalar_select %p3117_p4, 1, 0 }
  0x1b   : > { %s5205_s16 = scalar_select %p3113_p3, 1, 0 }
  0x1c   : > { %p3125_p7 = por %p3117_p4, %p200_p2  ;;  %p2283_p8 = scmp.ge.s32.totalorder %s2990_s11, 1 }
  0x1d   : > { %p3130_p9 = por %p207_p6, %p206_p5  ;;  %p3134_p10 = por %p207_p6, %p60_p0 }
  0x1e   : > { %s5207_s18 = scalar_select %p3125_p7, 1, 0 }
  0x1f   : > { %s5209_s19 = scalar_select %p3130_p9, 1, 0 }
  0x20   : > { %5208 = sst [smem:[#allocation18_spill]] %s5207_s18  ;;  %p240_p11 = scmp.lt.s32.totalorder %s2990_s11, 5 }
  0x21   : > { %5210 = sst [smem:[#allocation19_spill]] %s5209_s19  ;;  %s2992_s22 = smov [#allocation5]  }
  0x22   : > { %s5211_s20 = scalar_select %p3134_p10, 1, 0 }
  0x23   : > { %p3139_p12 = pnand %p2283_p8, %p240_p11  ;;  %s252_s23 = sshll.u32 %s2992_s22, 4  ;;  %s253_s23 = int_to_ptr.vmem [resolvable:$true] %s252_s23 }
  0x24   : > { %5212 = sst [smem:[#allocation20_spill]] %s5211_s20  ;;  %s2993_s13 = smov [#allocation7]  }
  0x25   : > { %s5213_s21 = scalar_select %p3139_p12, 1, 0 }
  0x26   : > { %p2528_p13 = pneg %p3139_p12  ;;  %s265_s15 = sshll.u32 %s2993_s13, 4  ;;  %s3151_s15 = int_to_ptr.vmem [resolvable:$true] %s265_s15 }
  0x27   : > { %s5215_s1 = sld [smem:[#allocation66_spill]] }
  0x28   : > { %p3147_p2 = pnand %p2528_p13, %p3104_p1 }
  0x2a   : > { %p2748_p5 = pneg %p3147_p2 }
  0x2d   : > { %s2746_s19 = scalar_lea.hbm %s5215_s1, 8192 }
  0x2e   : > { %p2747_p0 = scmp.ne.s32.totalorder %s5215_s1, %s2746_s19  ;;  %p2753_p11 = scmp.lt.u32.totalorder %s2746_s19, %s5215_s1 }
  0x30   : > { %p2749_p6 = pnand %p2748_p5, %p2747_p0 }
  0x32   : > { %p2750_p8 = pneg %p2749_p6 }
  0x34   : > { %p2755_p13 = pnand %p2753_p11, %p2750_p8 }
  0x36   : > { %2758 = shalt.err (!%p2755_p13)
}
  0x37   : > { %s2759_s13 = scalar_lea.vmem %s253_s23, 8192  ;;  %p2767_p1 = scmp.lt.s32.totalorder %s253_s23, %s253_s23 }
  0x38   : > { %p2760_p10 = scmp.ne.s32.totalorder %s253_s23, %s2759_s13  ;;  %p2768_p3 = scmp.lt.s32.totalorder %s2759_s13, %s2759_s13 }
  0x3a   : > { %p2762_p9 = pnand %p2760_p10, %p2748_p5  ;;  %p2769_p12 = por %p2768_p3, %p2767_p1 }
  0x3c   : > { %p2763_p7 = pneg %p2762_p9 }
  0x3e   : > { %p2770_p4 = pnand %p2769_p12, %p2763_p7 }
  0x40   : > { %2773 = shalt.err (!%p2770_p4)
}
  0x41   : > { %s2994_s24 = smov 256   ;;  %s2995_s27 = smov 16  }
  0x42   : > { %2531 = dma.hbm_to_vmem [thread:$0]  (!%p3147_p2), %s5215_s1, 8192, %s253_s23, [#allocation6], %s2994_s24, %s2994_s24, %s2995_s27  }
  0x43   : > { %s5216_s4 = sld [smem:[#allocation67_spill]] }
  0x49   : > { %s2774_s22 = scalar_lea.hbm %s5216_s4, 8192 }
  0x4a   : > { %p2775_p9 = scmp.ne.s32.totalorder %s5216_s4, %s2774_s22  ;;  %p2781_p4 = scmp.lt.u32.totalorder %s2774_s22, %s5216_s4 }
  0x4c   : > { %p2777_p1 = pnand %p2775_p9, %p2748_p5 }
  0x4e   : > { %p2778_p3 = pneg %p2777_p1 }
  0x50   : > { %p2783_p7 = pnand %p2781_p4, %p2778_p3 }
  0x52   : > { %2786 = shalt.err (!%p2783_p7)
}
  0x53   : > { %s2787_s23 = scalar_lea.vmem %s3151_s15, 8192  ;;  %p2795_p6 = scmp.lt.s32.totalorder %s3151_s15, %s3151_s15 }
  0x54   : > { %p2788_p10 = scmp.ne.s32.totalorder %s3151_s15, %s2787_s23  ;;  %p2796_p8 = scmp.lt.s32.totalorder %s2787_s23, %s2787_s23 }
  0x56   : > { %p2790_p12 = pnand %p2788_p10, %p2748_p5  ;;  %p2797_p11 = por %p2796_p8, %p2795_p6 }
  0x58   : > { %p2791_p0 = pneg %p2790_p12 }
  0x5a   : > { %p2798_p13 = pnand %p2797_p11, %p2791_p0 }
  0x5c   : > { %2801 = shalt.err (!%p2798_p13)
}
  0x5d   : > { %s5060_s5 = smov 128   ;;  %s5061_s8 = smov 8  }
  0x5e   : > { %2534 = dma.hbm_to_vmem [thread:$0]  (!%p3147_p2), %s5216_s4, 8192, %s3151_s15, [#allocation6], %s5060_s5, %s5060_s5, %s5061_s8  }
  0x5f   : > { %s37_s27 = sadd.s32 1, %s2982_s9  ;;  %s40_s6 = sadd.s32 1, %s2986_s10 }
  0x60   : > { %p38_p5 = scmp.ge.s32.totalorder %s37_s27, 2  ;;  %s47_s7 = sadd.s32 1, %s2970_s29 }
  0x61   : > { %p54_p9 = scmp.ne.s32.totalorder %s2970_s29, %s2966_s28  ;;  %p55_p1 = scmp.eq.s32.totalorder %s2990_s11, 0 }
  0x62   : > { %s5388_s27 = smov (%p38_p5, %s37_s27), 0  ;;  %s5390_s6 = smov (!%p38_p5, %s40_s6), %s2986_s10 }
  0x63   : > { %5217 = sst [smem:[#allocation21_spill]] %s5388_s27  ;;  %s186_s12 = ssub.s32 %s2982_s9, %s5388_s27 }
  0x64   : > { %p42_p3 = scmp.ge.s32.totalorder %s5390_s6, 2  ;;  %p5218_p4 = scmp.ne.s32.totalorder %s5206_s17, 0 }
  0x65   : > { %p3220_p2 = por %p55_p1, %p54_p9  ;;  %p2548_p10 = scmp.lt.s32.totalorder %s2990_s11, 4 }
  0x66   : > { %p3216_p7 = por %p5218_p4, %p54_p9  ;;  %s5392_s6 = smov (%p42_p3, %s5390_s6), 0 }
  0x67   : > { %5221 = sst [smem:[#allocation22_spill]] %s5392_s6  ;;  %s282_s20 = sand.u32 1, %s2970_s29  }
  0x68   : > { %s2509_s22 = sshll.u32 %s2986_s10, 12  ;;  %s44_s13 = ssub.s32 %s2986_s10, %s5392_s6 }
  0x69   : > { %p45_p12 = scmp.eq.s32.totalorder %s44_s13, 0  ;;  %s187_s23 = sor.u32 %s186_s12, %s44_s13 }
  0x6a   : > { %p188_p0 = scmp.eq.s32.totalorder %s187_s23, 0  ;;  %s2287_s17 = sshll.u32 %s282_s20, 8 }
  0x6b   : > { %s3232_s18 = scalar_select %p45_p12, %s2970_s29, %s47_s7  }
  0x6c   : > { %s5222_s24 = sadd.s32 1, %s2958_s26  ;;  %s5223_s0 = sld [smem:[#allocation65_spill]] }
  0x6d   : > { %s3237_s5 = scalar_select %p188_p0, %s2958_s26, %s5222_s24  }
  0x6e   : > { %s286_s27 = scalar_lea.vmem [#allocation2], %s2287_s17  ;;  %p3248_p6 = pnand %p2548_p10, %p3220_p2 }
  0x6f   : > { %s294_s6 = sshll.u32 %s286_s27, 4  ;;  %s3254_s7 = scalar_lea.sflag [#allocation3], %s282_s20  ;;  %s3252_s6 = int_to_ptr.vmem [resolvable:$true] %s294_s6 }
  0x70   : > { %p2804_p11 = pneg %p3248_p6 }
  0x72   : > { %s3242_s4 = scalar_lea.hbm %s5223_s0, %s2509_s22  ;;  %s2807_s19 = scalar_lea.hbm %s5223_s0, 8192 }
  0x73   : > { %s2802_s1 = scalar_lea.hbm %s3242_s4, 4096  ;;  %p2808_p9 = scmp.lt.u32.totalorder %s3242_s4, %s5223_s0 }
  0x74   : > { %p2803_p8 = scmp.ne.s32.totalorder %s3242_s4, %s2802_s1  ;;  %p2809_p1 = scmp.lt.u32.totalorder %s2807_s19, %s2802_s1 }
  0x75   : > { %p2811_p4 = scmp.lt.u32.totalorder %s2802_s1, %s3242_s4 }
  0x76   : > { %p2805_p13 = pnand %p2804_p11, %p2803_p8  ;;  %p2810_p3 = por %p2809_p1, %p2808_p9 }
  0x78   : > { %p2806_p5 = pneg %p2805_p13  ;;  %p2812_p2 = por %p2811_p4, %p2810_p3 }
  0x7a   : > { %p2813_p10 = pnand %p2812_p2, %p2806_p5 }
  0x7c   : > { %2816 = shalt.err (!%p2813_p10)
}
  0x7d   : > { %s2817_s20 = scalar_lea.vmem %s3252_s6, 4096  ;;  %s2998_s23 = smov [#allocation2]  }
  0x7e   : > { %p2818_p12 = scmp.ne.s32.totalorder %s3252_s6, %s2817_s20  ;;  %s2822_s17 = sshll.u32 %s2998_s23, 4  ;;  %s2823_s17 = int_to_ptr.vmem [resolvable:$false] %s2822_s17 }
  0x7f   : > { %s2824_s24 = scalar_lea.vmem %s2823_s17, 8192  ;;  %p2825_p13 = scmp.lt.s32.totalorder %s3252_s6, %s2823_s17 }
  0x80   : > { %p2820_p0 = pnand %p2818_p12, %p2804_p11  ;;  %p2826_p9 = scmp.lt.s32.totalorder %s2824_s24, %s2817_s20 }
  0x82   : > { %p2821_p8 = pneg %p2820_p0  ;;  %p2827_p1 = por %p2826_p9, %p2825_p13 }
  0x84   : > { %p2828_p3 = pnand %p2827_p1, %p2821_p8 }
  0x86   : > { %2831 = shalt.err (!%p2828_p3)
}
  0x87   : > { %s5225_s1 = smov 8   ;;  %s5226_s8 = smov 128  }
  0x88   : > { %2538 = dma.hbm_to_vmem [thread:$0]  (!%p3248_p6), %s3242_s4, 4096, %s3252_s6, %s3254_s7, %s5226_s8, %s5226_s8, %s5225_s1  }
  0x89   : > { %p5227_p11 = scmp.ne.s32.totalorder %s5213_s21, 0 }
  0x8b   : > { %322 = sbr.rel (%p5227_p11) target bundleno = 1072 (0x430), region = 44 }
  0x92   : > { %s3288_s27 = sand.u32 1, %s2966_s28   ;;  %p5228_p5 = scmp.ne.s32.totalorder %s5205_s16, 0 }
  0x93   : > { %s2292_s19 = sshll.u32 %s3288_s27, 8  ;;  %s325_s22 = scalar_lea.sflag [#allocation3], %s3288_s27 }
  0x94   : > { %s3292_s13 = scalar_lea.vmem [#allocation2], %s2292_s19 }
  0x95   : > { %2933 = dma.done.wait (%p5228_p5), %s325_s22, 4096  }
  0x96   : > { %2935 = vsyncadd (%p5228_p5), %s325_s22, 4294963200  ;;  %p5229_p6 = scmp.ne.s32.totalorder %s5204_s14, 0 }
  0x98   : > { %2937 = dma.done.wait (%p5229_p6), [#allocation6], 16384  }
  0x99   : > { %2939 = vsyncadd (%p5229_p6), [#allocation6], 4294950912  ;;  %s2296_s4 = sshll.u32 %s3288_s27, 9  ;;  %s2299_s21 = sshll.u32 %s2974_s30, 8  ;;  %v2700_v45 = vld [vmem:[%s3292_s13 + $0x4] ss:$8 sps:$4 sm:$0xff]  }
  0x9a   : > { %s395_s6 = sshra.s32 %s2299_s21, 7  ;;  %s3306_s20 = scalar_lea.vmem [#allocation7], %s2299_s21  ;;  %864 = vmatprep.mubr.bf16.mxu0 %v2700_v45  ;;  %v2718_v45 = vld [vmem:[%s3292_s13 + $0x60] ss:$8 sps:$4 sm:$0xff]  }
  0x9b   : > { %s2300_s12 = sshll.u32 %s395_s6, 2  ;;  %v3309_v0 = vld [vmem:[%s3306_s20] sm:$0xff]  ;;  %v3312_v1 = vld [vmem:[%s3306_s20 + $0x8] sm:$0xff]  ;;  %v3315_v2 = vld [vmem:[%s3306_s20 + $0x10] sm:$0xff]  ;;  %s3469_s14 = sshll.u32 %s2974_s30, 1 }
  0x9c   : > { %s3304_s7 = scalar_lea.vmem [#allocation5], %s2300_s12  ;;  %v3318_v3 = vld [vmem:[%s3306_s20 + $0x18] sm:$0xff]  ;;  %v3321_v4 = vld [vmem:[%s3306_s20 + $0x20] sm:$0xff]  ;;  %v3324_v5 = vld [vmem:[%s3306_s20 + $0x28] sm:$0xff]  ;;  %p382_p4 = scmp.lt.s32.totalorder %s3469_s14, 3 }
  0x9d   : > { %v3327_v6 = vld [vmem:[%s3306_s20 + $0x30] sm:$0xff]  ;;  %v3330_v7 = vld [vmem:[%s3306_s20 + $0x38] sm:$0xff]  ;;  %v3333_v8 = vld [vmem:[%s3306_s20 + $0x40] sm:$0xff]  ;;  %s370_s22 = sand.u32 1, %s2954_s25   ;;  %s4142_s6 = scalar_lea.vmem [#allocation9], %s2296_s4 }
  0x9e   : > { %v3336_v9 = vld [vmem:[%s3306_s20 + $0x48] sm:$0xff]  ;;  %v3339_v10 = vld [vmem:[%s3306_s20 + $0x50] sm:$0xff]  ;;  %v3342_v11 = vld [vmem:[%s3306_s20 + $0x58] sm:$0xff]  ;;  %s383_s16 = scalar_select %p382_p4, %s3469_s14, 3 }
  0x9f   : > { %v3345_v12 = vld [vmem:[%s3306_s20 + $0x60] sm:$0xff]  ;;  %v3348_v13 = vld [vmem:[%s3306_s20 + $0x68] sm:$0xff]  ;;  %v3351_v14 = vld [vmem:[%s3306_s20 + $0x70] sm:$0xff]  ;;  %p2367_p2 = scmp.ne.s32.totalorder %s2974_s30, 0 }
  0xa0   : > { %v3354_v15 = vld [vmem:[%s3306_s20 + $0x78] sm:$0xff]  ;;  %v3357_v16 = vld [vmem:[%s3306_s20 + $0x80] sm:$0xff]  ;;  %v3360_v17 = vld [vmem:[%s3306_s20 + $0x88] sm:$0xff]  ;;  %s384_s24 = scalar_lea.vmem %s5039_s2, %s383_s16  ;;  %s389_s19 = scalar_lea.vmem %s5040_s3, %s383_s16 }
  0xa1   : > { %v3363_v18 = vld [vmem:[%s3306_s20 + $0x90] sm:$0xff]  ;;  %v3366_v19 = vld [vmem:[%s3306_s20 + $0x98] sm:$0xff]  ;;  %v3369_v20 = vld [vmem:[%s3306_s20 + $0xa0] sm:$0xff] }
  0xa2   : > { %v3372_v21 = vld [vmem:[%s3306_s20 + $0xa8] sm:$0xff]  ;;  %v3375_v22 = vld [vmem:[%s3306_s20 + $0xb0] sm:$0xff]  ;;  %v3378_v23 = vld [vmem:[%s3306_s20 + $0xb8] sm:$0xff] }
  0xa3   : > { %v3381_v24 = vld [vmem:[%s3306_s20 + $0xc0] sm:$0xff]  ;;  %v3384_v25 = vld [vmem:[%s3306_s20 + $0xc8] sm:$0xff]  ;;  %v3387_v26 = vld [vmem:[%s3306_s20 + $0xd0] sm:$0xff] }
  0xa4   : > { %v3390_v27 = vld [vmem:[%s3306_s20 + $0xd8] sm:$0xff]  ;;  %v3393_v28 = vld [vmem:[%s3306_s20 + $0xe0] sm:$0xff]  ;;  %v3396_v29 = vld [vmem:[%s3306_s20 + $0xe8] sm:$0xff] }
  0xa5   : > { %v3399_v30 = vld [vmem:[%s3306_s20 + $0xf0] sm:$0xff]  ;;  %v3402_v31 = vld [vmem:[%s3306_s20 + $0xf8] sm:$0xff] }
  0xa6   : > { %v2650_v32 = vld [vmem:[%s3304_s7 + $0x4] ss:$16 sps:$4 sm:$0xff]   ;;  %v2652_v33 = vld [vmem:[%s3304_s7] ss:$16 sps:$4 sm:$0xff]  }
  0xa7   : > { %v2653_v34 = vld [vmem:[%s3304_s7 + $0x24] ss:$16 sps:$4 sm:$0xff]   ;;  %832 = vmatprep.subr.bf16.mxu0 %v2650_v32  ;;  %v2655_v35 = vld [vmem:[%s3304_s7 + $0x20] ss:$16 sps:$4 sm:$0xff]  }
  0xa8   : > { %833 = vmatpush1.bf16.msra.mxu0 %v2652_v33  ;;  %v2656_v36 = vld [vmem:[%s3304_s7 + $0x44] ss:$16 sps:$4 sm:$0xff]   ;;  %v2658_v37 = vld [vmem:[%s3304_s7 + $0x40] ss:$16 sps:$4 sm:$0xff]  }
  0xa9   : > { %834 = vmatprep.subr.bf16.mxu0 %v2653_v34  ;;  %v2659_v38 = vld [vmem:[%s3304_s7 + $0x64] ss:$16 sps:$4 sm:$0xff]   ;;  %v2661_v39 = vld [vmem:[%s3304_s7 + $0x60] ss:$16 sps:$4 sm:$0xff]  }
  0xaa   : > { %v2662_v40 = vld [vmem:[%s3304_s7 + $0x84] ss:$16 sps:$4 sm:$0xff]   ;;  %v2664_v41 = vld [vmem:[%s3304_s7 + $0x80] ss:$16 sps:$4 sm:$0xff]  }
  0xab   : > { %v2665_v42 = vld [vmem:[%s3304_s7 + $0xa4] ss:$16 sps:$4 sm:$0xff]   ;;  %v2667_v43 = vld [vmem:[%s3304_s7 + $0xa0] ss:$16 sps:$4 sm:$0xff]  }
  0xac   : > { %835 = vmatpush1.bf16.msra.mxu0 %v2655_v35  ;;  %v2668_v44 = vld [vmem:[%s3304_s7 + $0xc4] ss:$16 sps:$4 sm:$0xff]   ;;  %v2670_v46 = vld [vmem:[%s3304_s7 + $0xc0] ss:$16 sps:$4 sm:$0xff]  }
  0xad   : > { %836 = vmatprep.subr.bf16.mxu0 %v2656_v36  ;;  %v2671_v47 = vld [vmem:[%s3304_s7 + $0xe4] ss:$16 sps:$4 sm:$0xff]   ;;  %v2673_v48 = vld [vmem:[%s3304_s7 + $0xe0] ss:$16 sps:$4 sm:$0xff]  }
  0xae   : > { %v2674_v49 = vld [vmem:[%s3304_s7 + $0x104] ss:$16 sps:$4 sm:$0xff]   ;;  %v2676_v50 = vld [vmem:[%s3304_s7 + $0x100] ss:$16 sps:$4 sm:$0xff]  }
  0xaf   : > { %v2677_v51 = vld [vmem:[%s3304_s7 + $0x124] ss:$16 sps:$4 sm:$0xff]   ;;  %v2679_v52 = vld [vmem:[%s3304_s7 + $0x120] ss:$16 sps:$4 sm:$0xff]  }
  0xb0   : > { %837 = vmatpush1.bf16.msra.mxu0 %v2658_v37  ;;  %v2680_v53 = vld [vmem:[%s3304_s7 + $0x144] ss:$16 sps:$4 sm:$0xff]   ;;  %v2682_v54 = vld [vmem:[%s3304_s7 + $0x140] ss:$16 sps:$4 sm:$0xff]  }
  0xb1   : > { %838 = vmatprep.subr.bf16.mxu0 %v2659_v38  ;;  %v2683_v55 = vld [vmem:[%s3304_s7 + $0x164] ss:$16 sps:$4 sm:$0xff]   ;;  %v2685_v56 = vld [vmem:[%s3304_s7 + $0x160] ss:$16 sps:$4 sm:$0xff]  }
  0xb2   : > { %v2686_v57 = vld [vmem:[%s3304_s7 + $0x184] ss:$16 sps:$4 sm:$0xff]   ;;  %v2688_v58 = vld [vmem:[%s3304_s7 + $0x180] ss:$16 sps:$4 sm:$0xff]  }
  0xb3   : > { %v2689_v59 = vld [vmem:[%s3304_s7 + $0x1a4] ss:$16 sps:$4 sm:$0xff]   ;;  %v2691_v60 = vld [vmem:[%s3304_s7 + $0x1a0] ss:$16 sps:$4 sm:$0xff]  }
  0xb4   : > { %839 = vmatpush1.bf16.msra.mxu0 %v2661_v39  ;;  %v2692_v61 = vld [vmem:[%s3304_s7 + $0x1c4] ss:$16 sps:$4 sm:$0xff]   ;;  %v2694_v62 = vld [vmem:[%s3304_s7 + $0x1c0] ss:$16 sps:$4 sm:$0xff]  }
  0xb5   : > { %840 = vmatprep.subr.bf16.mxu0 %v2662_v40  ;;  %v2695_v63 = vld [vmem:[%s3304_s7 + $0x1e4] ss:$16 sps:$4 sm:$0xff]   ;;  %v2697_v32 = vld [vmem:[%s3304_s7 + $0x1e0] ss:$16 sps:$4 sm:$0xff]  }
  0xb6   : > { %v2698_v33 = vld [vmem:[%s3292_s13] ss:$8 sps:$4 sm:$0xff]   ;;  %v2701_v34 = vld [vmem:[%s3292_s13 + $0x14] ss:$8 sps:$4 sm:$0xff]   ;;  %v2703_v35 = vld [vmem:[%s3292_s13 + $0x10] ss:$8 sps:$4 sm:$0xff]  }
  0xb7   : > { %v2704_v36 = vld [vmem:[%s3292_s13 + $0x24] ss:$8 sps:$4 sm:$0xff]   ;;  %v2706_v37 = vld [vmem:[%s3292_s13 + $0x20] ss:$8 sps:$4 sm:$0xff]   ;;  %v2707_v38 = vld [vmem:[%s3292_s13 + $0x34] ss:$8 sps:$4 sm:$0xff]  }
  0xb8   : > { %841 = vmatpush1.bf16.msra.mxu0 %v2664_v41  ;;  %v2709_v39 = vld [vmem:[%s3292_s13 + $0x30] ss:$8 sps:$4 sm:$0xff]   ;;  %v2710_v40 = vld [vmem:[%s3292_s13 + $0x44] ss:$8 sps:$4 sm:$0xff]   ;;  %v2712_v41 = vld [vmem:[%s3292_s13 + $0x40] ss:$8 sps:$4 sm:$0xff]  }
  0xb9   : > { %842 = vmatprep.subr.bf16.mxu0 %v2665_v42  ;;  %v2713_v42 = vld [vmem:[%s3292_s13 + $0x54] ss:$8 sps:$4 sm:$0xff]  }
  0xbc   : > { %843 = vmatpush1.bf16.msra.mxu0 %v2667_v43  ;;  %v2715_v43 = vld [vmem:[%s3292_s13 + $0x50] ss:$8 sps:$4 sm:$0xff]  }
  0xbd   : > { %844 = vmatprep.subr.bf16.mxu0 %v2668_v44  ;;  %v2716_v44 = vld [vmem:[%s3292_s13 + $0x64] ss:$8 sps:$4 sm:$0xff]  }
  0xc0   : > { %845 = vmatpush1.bf16.msra.mxu0 %v2670_v46  ;;  %v2719_v46 = vld [vmem:[%s3292_s13 + $0x74] ss:$8 sps:$4 sm:$0xff]  }
  0xc1   : > { %846 = vmatprep.subr.bf16.mxu0 %v2671_v47  ;;  %v2721_v47 = vld [vmem:[%s3292_s13 + $0x70] ss:$8 sps:$4 sm:$0xff]  }
  0xc4   : > { %847 = vmatpush1.bf16.msra.mxu0 %v2673_v48  ;;  %v2722_v48 = vld [vmem:[%s3292_s13 + $0x84] ss:$8 sps:$4 sm:$0xff]  }
  0xc5   : > { %848 = vmatprep.subr.bf16.mxu0 %v2674_v49  ;;  %v2724_v49 = vld [vmem:[%s3292_s13 + $0x80] ss:$8 sps:$4 sm:$0xff]  }
  0xc8   : > { %849 = vmatpush1.bf16.msra.mxu0 %v2676_v50  ;;  %v2725_v50 = vld [vmem:[%s3292_s13 + $0x94] ss:$8 sps:$4 sm:$0xff]  }
  0xc9   : > { %850 = vmatprep.subr.bf16.mxu0 %v2677_v51  ;;  %v2727_v51 = vld [vmem:[%s3292_s13 + $0x90] ss:$8 sps:$4 sm:$0xff]  }
  0xcc   : > { %851 = vmatpush1.bf16.msra.mxu0 %v2679_v52  ;;  %v2728_v52 = vld [vmem:[%s3292_s13 + $0xa4] ss:$8 sps:$4 sm:$0xff]  }
  0xcd   : > { %852 = vmatprep.subr.bf16.mxu0 %v2680_v53  ;;  %v2730_v53 = vld [vmem:[%s3292_s13 + $0xa0] ss:$8 sps:$4 sm:$0xff]  }
  0xd0   : > { %853 = vmatpush1.bf16.msra.mxu0 %v2682_v54  ;;  %v2731_v54 = vld [vmem:[%s3292_s13 + $0xb4] ss:$8 sps:$4 sm:$0xff]  }
  0xd1   : > { %854 = vmatprep.subr.bf16.mxu0 %v2683_v55  ;;  %v2733_v55 = vld [vmem:[%s3292_s13 + $0xb0] ss:$8 sps:$4 sm:$0xff]  }
  0xd4   : > { %855 = vmatpush1.bf16.msra.mxu0 %v2685_v56  ;;  %v2734_v56 = vld [vmem:[%s3292_s13 + $0xc4] ss:$8 sps:$4 sm:$0xff]  }
  0xd5   : > { %856 = vmatprep.subr.bf16.mxu0 %v2686_v57  ;;  %v2736_v57 = vld [vmem:[%s3292_s13 + $0xc0] ss:$8 sps:$4 sm:$0xff]  }
  0xd8   : > { %857 = vmatpush1.bf16.msra.mxu0 %v2688_v58  ;;  %v2737_v58 = vld [vmem:[%s3292_s13 + $0xd4] ss:$8 sps:$4 sm:$0xff]  }
  0xd9   : > { %858 = vmatprep.subr.bf16.mxu0 %v2689_v59  ;;  %v2739_v59 = vld [vmem:[%s3292_s13 + $0xd0] ss:$8 sps:$4 sm:$0xff]  }
  0xdc   : > { %859 = vmatpush1.bf16.msra.mxu0 %v2691_v60  ;;  %v2740_v60 = vld [vmem:[%s3292_s13 + $0xe4] ss:$8 sps:$4 sm:$0xff]  }
  0xdd   : > { %860 = vmatprep.subr.bf16.mxu0 %v2692_v61  ;;  %v2742_v61 = vld [vmem:[%s3292_s13 + $0xe0] ss:$8 sps:$4 sm:$0xff]  }
  0xe0   : > { %861 = vmatpush1.bf16.msra.mxu0 %v2694_v62  ;;  %v2743_v62 = vld [vmem:[%s3292_s13 + $0xf4] ss:$8 sps:$4 sm:$0xff]  }
  0xe1   : > { %862 = vmatprep.subr.bf16.mxu0 %v2695_v63  ;;  %v2745_v63 = vld [vmem:[%s3292_s13 + $0xf0] ss:$8 sps:$4 sm:$0xff]   ;;  %s2295_s13 = sshll.u32 %s370_s22, 9 }
  0xe2   : > { %s3518_s21 = scalar_lea.vmem [#allocation8], %s2295_s13 }
  0xe4   : > { %863 = vmatpush1.bf16.msra.mxu0 %v2697_v32  ;;  %v502_v32 = vlaneseq }
  0xe7   : > { %865 = vmatmul.mubr.bf16.vlgmr.msra.gmra.mrb[0].mxu0 %v2698_v33  ;;  %v503_v33 = vshrl.u32 %v502_v32, 7 }
  0xe8   : > { %874 = vmatprep.mubr.bf16.mxu0 %v2701_v34 }
  0xe9   : > { %v3479_v34 = vsub.s32 0, %v503_v33 }
  0xeb   : > { %5230 = vst [vmem:[#allocation23_spill] sm:$0xff] %v3479_v34 }
  0xef   : > { %875 = vmatmul.mubr.bf16.gmra.mrb[4].mxu0 %v2703_v35  ;;  %v500_v35 = vld [vmem:[%s384_s24] sm:$0x3] }
  0xf0   : > { %884 = vmatprep.mubr.bf16.mxu0 %v2704_v36  ;;  %v3481_v36 = vsub.s32 1, %v503_v33 }
  0xf2   : > { %5231 = vst [vmem:[#allocation24_spill] sm:$0xff] %v3481_v36 }
  0xf7   : > { %885 = vmatmul.mubr.bf16.gmra.mrb[8].mxu0 %v2706_v37  ;;  %v1025_v37 = vld [vmem:[%s389_s19] sm:$0x3] }
  0xf8   : > { %894 = vmatprep.mubr.bf16.mxu0 %v2707_v38  ;;  %v3485_v38 = vrot.slane %v500_v35, %v3479_v34 }
  0xff   : > { %895 = vmatmul.mubr.bf16.gmra.mrb[12].mxu0 %v2709_v39  ;;  %v3488_v39 = vrot.slane %v500_v35, %v3481_v36 }
 0x100   : > { %904 = vmatprep.mubr.bf16.mxu0 %v2710_v40  ;;  %v3493_v40 = vrot.slane %v1025_v37, %v3479_v34 }
 0x107   : > { %905 = vmatmul.mubr.bf16.gmra.mrb[16].mxu0 %v2712_v41 }
 0x108   : > { %914 = vmatprep.mubr.bf16.mxu0 %v2713_v42  ;;  %v3496_v42 = vrot.slane %v1025_v37, %v3481_v36 }
 0x10f   : > { %915 = vmatmul.mubr.bf16.gmra.mrb[20].mxu0 %v2715_v43 }
 0x110   : > { %924 = vmatprep.mubr.bf16.mxu0 %v2716_v44 }
 0x117   : > { %925 = vmatmul.mubr.bf16.gmra.mrb[24].mxu0 %v2718_v45 }
 0x118   : > { %934 = vmatprep.mubr.bf16.mxu0 %v2719_v46 }
 0x11f   : > { %935 = vmatmul.mubr.bf16.gmra.mrb[28].mxu0 %v2721_v47 }
 0x120   : > { %944 = vmatprep.mubr.bf16.mxu0 %v2722_v48 }
 0x127   : > { %945 = vmatmul.mubr.bf16.gmra.mrb[32].mxu0 %v2724_v49 }
 0x128   : > { %954 = vmatprep.mubr.bf16.mxu0 %v2725_v50 }
 0x12f   : > { %955 = vmatmul.mubr.bf16.gmra.mrb[36].mxu0 %v2727_v51 }
 0x130   : > { %964 = vmatprep.mubr.bf16.mxu0 %v2728_v52 }
 0x137   : > { %965 = vmatmul.mubr.bf16.gmra.mrb[40].mxu0 %v2730_v53 }
 0x138   : > { %974 = vmatprep.mubr.bf16.mxu0 %v2731_v54 }
 0x13f   : > { %975 = vmatmul.mubr.bf16.gmra.mrb[44].mxu0 %v2733_v55 }
 0x140   : > { %984 = vmatprep.mubr.bf16.mxu0 %v2734_v56 }
 0x147   : > { %985 = vmatmul.mubr.bf16.gmra.mrb[48].mxu0 %v2736_v57 }
 0x148   : > { %994 = vmatprep.mubr.bf16.mxu0 %v2737_v58 }
 0x14f   : > { %995 = vmatmul.mubr.bf16.gmra.mrb[52].mxu0 %v2739_v59 }
 0x150   : > { %1004 = vmatprep.mubr.bf16.mxu0 %v2740_v60 }
 0x157   : > { %1005 = vmatmul.mubr.bf16.gmra.mrb[56].mxu0 %v2742_v61 }
 0x158   : > { %1014 = vmatprep.mubr.bf16.mxu0 %v2743_v62 }
 0x15f   : > { %1015 = vmatmul.mubr.bf16.gmra.mrb[60].mxu0 %v2745_v63 }
 0x1ba   : > { %v866_v41 = vpop.f32.mrb[0].mxu0 }
 0x1bb   : > { %v3499_v43 = vadd.f32 %v866_v41, %v3485_v38  ;;  %v868_v44 = vpop.f32.mrb[1].mxu0 }
 0x1bc   : > { %v3502_v45 = vadd.f32 %v868_v44, %v3488_v39  ;;  %v870_v46 = vpop.f32.mrb[2].mxu0 }
 0x1bd   : > { %vm1037_vm0 = vcmp.gt.f32.partialorder %v3499_v43, %v3493_v40  ;;  %v3507_v47 = vadd.f32 %v870_v46, %v3485_v38  ;;  %v872_v48 = vpop.f32.mrb[3].mxu0 }
 0x1be   : > { %v1101_v49 = vsel %vm1037_vm0, %v3499_v43, 0.0  ;;  %vm1038_vm1 = vcmp.gt.f32.partialorder %v3502_v45, %v3496_v42  ;;  %v3516_v50 = vadd.f32 %v872_v48, %v3488_v39 }
 0x1bf   : > { %1165 = vst [vmem:[%s3518_s21] sm:$0xff] %v1101_v49  ;;  %v1102_v51 = vsel %vm1038_vm1, %v3502_v45, 0.0  ;;  %vm1039_vm2 = vcmp.gt.f32.partialorder %v3507_v47, %v3493_v40 }
 0x1c0   : > { %1166 = vst [vmem:[%s3518_s21 + $0x8] sm:$0xff] %v1102_v51  ;;  %v1103_v52 = vsel %vm1039_vm2, %v3507_v47, 0.0  ;;  %vm1040_vm3 = vcmp.gt.f32.partialorder %v3516_v50, %v3496_v42 }
 0x1c1   : > { %1167 = vst [vmem:[%s3518_s21 + $0x10] sm:$0xff] %v1103_v52  ;;  %v1104_v53 = vsel %vm1040_vm3, %v3516_v50, 0.0 }
 0x1c2   : > { %1168 = vst [vmem:[%s3518_s21 + $0x18] sm:$0xff] %v1104_v53  ;;  %v876_v54 = vpop.f32.mrb[4].mxu0 }
 0x1c3   : > { %v3541_v55 = vadd.f32 %v876_v54, %v3485_v38  ;;  %v878_v56 = vpop.f32.mrb[5].mxu0 }
 0x1c4   : > { %v3544_v57 = vadd.f32 %v878_v56, %v3488_v39  ;;  %v880_v58 = vpop.f32.mrb[6].mxu0 }
 0x1c5   : > { %vm1041_vm4 = vcmp.gt.f32.partialorder %v3541_v55, %v3493_v40  ;;  %v3549_v59 = vadd.f32 %v880_v58, %v3485_v38  ;;  %v882_v60 = vpop.f32.mrb[7].mxu0 }
 0x1c6   : > { %v1105_v61 = vsel %vm1041_vm4, %v3541_v55, 0.0  ;;  %vm1042_vm5 = vcmp.gt.f32.partialorder %v3544_v57, %v3496_v42  ;;  %v3558_v62 = vadd.f32 %v882_v60, %v3488_v39 }
 0x1c7   : > { %1169 = vst [vmem:[%s3518_s21 + $0x20] sm:$0xff] %v1105_v61  ;;  %v1106_v63 = vsel %vm1042_vm5, %v3544_v57, 0.0  ;;  %vm1043_vm6 = vcmp.gt.f32.partialorder %v3549_v59, %v3493_v40 }
 0x1c8   : > { %1170 = vst [vmem:[%s3518_s21 + $0x28] sm:$0xff] %v1106_v63  ;;  %v1107_v32 = vsel %vm1043_vm6, %v3549_v59, 0.0  ;;  %vm1044_vm7 = vcmp.gt.f32.partialorder %v3558_v62, %v3496_v42 }
 0x1c9   : > { %1171 = vst [vmem:[%s3518_s21 + $0x30] sm:$0xff] %v1107_v32  ;;  %v1108_v33 = vsel %vm1044_vm7, %v3558_v62, 0.0 }
 0x1ca   : > { %1172 = vst [vmem:[%s3518_s21 + $0x38] sm:$0xff] %v1108_v33  ;;  %v886_v35 = vpop.f32.mrb[8].mxu0 }
 0x1cb   : > { %v3581_v37 = vadd.f32 %v886_v35, %v3485_v38  ;;  %v888_v41 = vpop.f32.mrb[9].mxu0 }
 0x1cc   : > { %v3584_v44 = vadd.f32 %v888_v41, %v3488_v39  ;;  %v890_v46 = vpop.f32.mrb[10].mxu0 }
 0x1cd   : > { %vm1045_vm8 = vcmp.gt.f32.partialorder %v3581_v37, %v3493_v40  ;;  %v3589_v48 = vadd.f32 %v890_v46, %v3485_v38  ;;  %v892_v49 = vpop.f32.mrb[11].mxu0 }
 0x1ce   : > { %v1109_v51 = vsel %vm1045_vm8, %v3581_v37, 0.0  ;;  %vm1046_vm9 = vcmp.gt.f32.partialorder %v3584_v44, %v3496_v42  ;;  %v3598_v52 = vadd.f32 %v892_v49, %v3488_v39 }
 0x1cf   : > { %1173 = vst [vmem:[%s3518_s21 + $0x40] sm:$0xff] %v1109_v51  ;;  %v1110_v53 = vsel %vm1046_vm9, %v3584_v44, 0.0  ;;  %vm1047_vm10 = vcmp.gt.f32.partialorder %v3589_v48, %v3493_v40 }
 0x1d0   : > { %1174 = vst [vmem:[%s3518_s21 + $0x48] sm:$0xff] %v1110_v53  ;;  %v1111_v54 = vsel %vm1047_vm10, %v3589_v48, 0.0  ;;  %vm1048_vm11 = vcmp.gt.f32.partialorder %v3598_v52, %v3496_v42 }
 0x1d1   : > { %1175 = vst [vmem:[%s3518_s21 + $0x50] sm:$0xff] %v1111_v54  ;;  %v1112_v56 = vsel %vm1048_vm11, %v3598_v52, 0.0 }
 0x1d2   : > { %1176 = vst [vmem:[%s3518_s21 + $0x58] sm:$0xff] %v1112_v56  ;;  %v896_v58 = vpop.f32.mrb[12].mxu0 }
 0x1d3   : > { %v3621_v60 = vadd.f32 %v896_v58, %v3485_v38  ;;  %v898_v61 = vpop.f32.mrb[13].mxu0 }
 0x1d4   : > { %v3624_v63 = vadd.f32 %v898_v61, %v3488_v39  ;;  %v900_v32 = vpop.f32.mrb[14].mxu0 }
 0x1d5   : > { %vm5065_vm12 = vcmp.gt.f32.partialorder %v3621_v60, %v3493_v40  ;;  %v3629_v33 = vadd.f32 %v900_v32, %v3485_v38  ;;  %v902_v35 = vpop.f32.mrb[15].mxu0 }
 0x1d6   : > { %v1113_v41 = vsel %vm5065_vm12, %v3621_v60, 0.0  ;;  %vm1050_vm13 = vcmp.gt.f32.partialorder %v3624_v63, %v3496_v42  ;;  %v3638_v46 = vadd.f32 %v902_v35, %v3488_v39 }
 0x1d7   : > { %1177 = vst [vmem:[%s3518_s21 + $0x60] sm:$0xff] %v1113_v41  ;;  %v1114_v49 = vsel %vm1050_vm13, %v3624_v63, 0.0  ;;  %vm5064_vm14 = vcmp.gt.f32.partialorder %v3629_v33, %v3493_v40 }
 0x1d8   : > { %1178 = vst [vmem:[%s3518_s21 + $0x68] sm:$0xff] %v1114_v49  ;;  %v1115_v51 = vsel %vm5064_vm14, %v3629_v33, 0.0  ;;  %vm5066_vm15 = vcmp.gt.f32.partialorder %v3638_v46, %v3496_v42 }
 0x1d9   : > { %1179 = vst [vmem:[%s3518_s21 + $0x70] sm:$0xff] %v1115_v51  ;;  %v1116_v53 = vsel %vm5066_vm15, %v3638_v46, 0.0 }
 0x1da   : > { %1180 = vst [vmem:[%s3518_s21 + $0x78] sm:$0xff] %v1116_v53  ;;  %v906_v54 = vpop.f32.mrb[16].mxu0 }
 0x1db   : > { %v3661_v56 = vadd.f32 %v906_v54, %v3485_v38  ;;  %v908_v58 = vpop.f32.mrb[17].mxu0 }
 0x1dc   : > { %v3664_v61 = vadd.f32 %v908_v58, %v3488_v39  ;;  %v910_v32 = vpop.f32.mrb[18].mxu0 }
 0x1dd   : > { %vm5067_vm14 = vcmp.gt.f32.partialorder %v3661_v56, %v3493_v40  ;;  %v3669_v35 = vadd.f32 %v910_v32, %v3485_v38  ;;  %v912_v41 = vpop.f32.mrb[19].mxu0 }
 0x1de   : > { %v1117_v49 = vsel %vm5067_vm14, %v3661_v56, 0.0  ;;  %vm5072_vm12 = vcmp.gt.f32.partialorder %v3664_v61, %v3496_v42  ;;  %v3678_v51 = vadd.f32 %v912_v41, %v3488_v39 }
 0x1df   : > { %1181 = vst [vmem:[%s3518_s21 + $0x80] sm:$0xff] %v1117_v49  ;;  %v1118_v53 = vsel %vm5072_vm12, %v3664_v61, 0.0  ;;  %vm5069_vm15 = vcmp.gt.f32.partialorder %v3669_v35, %v3493_v40 }
 0x1e0   : > { %1182 = vst [vmem:[%s3518_s21 + $0x88] sm:$0xff] %v1118_v53  ;;  %v1119_v54 = vsel %vm5069_vm15, %v3669_v35, 0.0  ;;  %vm5071_vm14 = vcmp.gt.f32.partialorder %v3678_v51, %v3496_v42 }
 0x1e1   : > { %1183 = vst [vmem:[%s3518_s21 + $0x90] sm:$0xff] %v1119_v54  ;;  %v1120_v58 = vsel %vm5071_vm14, %v3678_v51, 0.0 }
 0x1e2   : > { %1184 = vst [vmem:[%s3518_s21 + $0x98] sm:$0xff] %v1120_v58  ;;  %v916_v32 = vpop.f32.mrb[20].mxu0 }
 0x1e3   : > { %v3701_v41 = vadd.f32 %v916_v32, %v3485_v38  ;;  %v918_v49 = vpop.f32.mrb[21].mxu0 }
 0x1e4   : > { %v3704_v53 = vadd.f32 %v918_v49, %v3488_v39  ;;  %v920_v36 = vpop.f32.mrb[22].mxu0 }
 0x1e5   : > { %5232 = vst [vmem:[#allocation25_spill] sm:$0xff] %v3701_v41  ;;  %vm5073_vm15 = vcmp.gt.f32.partialorder %v3701_v41, %v3493_v40  ;;  %v3709_v54 = vadd.f32 %v920_v36, %v3485_v38  ;;  %v922_v34 = vpop.f32.mrb[23].mxu0 }
 0x1e6   : > { %5233 = vst [vmem:[#allocation26_spill] sm:$0xff] %v3704_v53  ;;  %v1121_v58 = vsel %vm5073_vm15, %v3701_v41, 0.0  ;;  %vm5084_vm14 = vcmp.gt.f32.partialorder %v3704_v53, %v3496_v42  ;;  %v3718_v32 = vadd.f32 %v922_v34, %v3488_v39 }
 0x1e7   : > { %5234 = vst [vmem:[#allocation27_spill] sm:$0xff] %v3709_v54  ;;  %1185 = vst [vmem:[%s3518_s21 + $0xa0] sm:$0xff] %v1121_v58  ;;  %v1122_v49 = vsel %vm5084_vm14, %v3704_v53, 0.0  ;;  %vm5080_vm12 = vcmp.gt.f32.partialorder %v3709_v54, %v3493_v40 }
 0x1e8   : > { %5235 = vst [vmem:[#allocation28_spill] sm:$0xff] %v3718_v32  ;;  %1186 = vst [vmem:[%s3518_s21 + $0xa8] sm:$0xff] %v1122_v49  ;;  %v1123_v36 = vsel %vm5080_vm12, %v3709_v54, 0.0  ;;  %vm5083_vm15 = vcmp.gt.f32.partialorder %v3718_v32, %v3496_v42 }
 0x1e9   : > { %1187 = vst [vmem:[%s3518_s21 + $0xb0] sm:$0xff] %v1123_v36  ;;  %v1124_v34 = vsel %vm5083_vm15, %v3718_v32, 0.0 }
 0x1ea   : > { %1188 = vst [vmem:[%s3518_s21 + $0xb8] sm:$0xff] %v1124_v34  ;;  %v926_v58 = vpop.f32.mrb[24].mxu0 }
 0x1eb   : > { %v3741_v49 = vadd.f32 %v926_v58, %v3485_v38  ;;  %v928_v41 = vpop.f32.mrb[25].mxu0 }
 0x1ec   : > { %v3744_v54 = vadd.f32 %v928_v41, %v3488_v39  ;;  %v930_v53 = vpop.f32.mrb[26].mxu0 }
 0x1ed   : > { %5236 = vst [vmem:[#allocation29_spill] sm:$0xff] %v3741_v49  ;;  %vm5085_vm12 = vcmp.gt.f32.partialorder %v3741_v49, %v3493_v40  ;;  %v3749_v36 = vadd.f32 %v930_v53, %v3485_v38  ;;  %v932_v32 = vpop.f32.mrb[27].mxu0 }
 0x1ee   : > { %5237 = vst [vmem:[#allocation30_spill] sm:$0xff] %v3744_v54  ;;  %v1125_v34 = vsel %vm5085_vm12, %v3741_v49, 0.0  ;;  %vm5096_vm15 = vcmp.gt.f32.partialorder %v3744_v54, %v3496_v42  ;;  %v3758_v41 = vadd.f32 %v932_v32, %v3488_v39 }
 0x1ef   : > { %5238 = vst [vmem:[#allocation31_spill] sm:$0xff] %v3749_v36  ;;  %1189 = vst [vmem:[%s3518_s21 + $0xc0] sm:$0xff] %v1125_v34  ;;  %v1126_v58 = vsel %vm5096_vm15, %v3744_v54, 0.0  ;;  %vm5092_vm14 = vcmp.gt.f32.partialorder %v3749_v36, %v3493_v40 }
 0x1f0   : > { %5239 = vst [vmem:[#allocation32_spill] sm:$0xff] %v3758_v41  ;;  %1190 = vst [vmem:[%s3518_s21 + $0xc8] sm:$0xff] %v1126_v58  ;;  %v1127_v53 = vsel %vm5092_vm14, %v3749_v36, 0.0  ;;  %vm5095_vm12 = vcmp.gt.f32.partialorder %v3758_v41, %v3496_v42 }
 0x1f1   : > { %1191 = vst [vmem:[%s3518_s21 + $0xd0] sm:$0xff] %v1127_v53  ;;  %v1128_v32 = vsel %vm5095_vm12, %v3758_v41, 0.0 }
 0x1f2   : > { %1192 = vst [vmem:[%s3518_s21 + $0xd8] sm:$0xff] %v1128_v32  ;;  %v936_v34 = vpop.f32.mrb[28].mxu0 }
 0x1f3   : > { %v3781_v58 = vadd.f32 %v936_v34, %v3485_v38  ;;  %v938_v49 = vpop.f32.mrb[29].mxu0 }
 0x1f4   : > { %v3784_v36 = vadd.f32 %v938_v49, %v3488_v39  ;;  %v940_v54 = vpop.f32.mrb[30].mxu0 }
 0x1f5   : > { %5240 = vst [vmem:[#allocation33_spill] sm:$0xff] %v3781_v58  ;;  %vm5097_vm14 = vcmp.gt.f32.partialorder %v3781_v58, %v3493_v40  ;;  %v3789_v53 = vadd.f32 %v940_v54, %v3485_v38  ;;  %v942_v41 = vpop.f32.mrb[31].mxu0 }
 0x1f6   : > { %5241 = vst [vmem:[#allocation34_spill] sm:$0xff] %v3784_v36  ;;  %v1129_v32 = vsel %vm5097_vm14, %v3781_v58, 0.0  ;;  %vm5108_vm12 = vcmp.gt.f32.partialorder %v3784_v36, %v3496_v42  ;;  %v3798_v49 = vadd.f32 %v942_v41, %v3488_v39 }
 0x1f7   : > { %5242 = vst [vmem:[#allocation35_spill] sm:$0xff] %v3789_v53  ;;  %1193 = vst [vmem:[%s3518_s21 + $0xe0] sm:$0xff] %v1129_v32  ;;  %v1130_v34 = vsel %vm5108_vm12, %v3784_v36, 0.0  ;;  %vm5104_vm15 = vcmp.gt.f32.partialorder %v3789_v53, %v3493_v40 }
 0x1f8   : > { %5243 = vst [vmem:[#allocation36_spill] sm:$0xff] %v3798_v49  ;;  %1194 = vst [vmem:[%s3518_s21 + $0xe8] sm:$0xff] %v1130_v34  ;;  %v1131_v54 = vsel %vm5104_vm15, %v3789_v53, 0.0  ;;  %vm5107_vm14 = vcmp.gt.f32.partialorder %v3798_v49, %v3496_v42 }
 0x1f9   : > { %1195 = vst [vmem:[%s3518_s21 + $0xf0] sm:$0xff] %v1131_v54  ;;  %v1132_v41 = vsel %vm5107_vm14, %v3798_v49, 0.0 }
 0x1fa   : > { %1196 = vst [vmem:[%s3518_s21 + $0xf8] sm:$0xff] %v1132_v41  ;;  %v946_v32 = vpop.f32.mrb[32].mxu0 }
 0x1fb   : > { %v3821_v34 = vadd.f32 %v946_v32, %v3485_v38  ;;  %v948_v58 = vpop.f32.mrb[33].mxu0 }
 0x1fc   : > { %v3824_v53 = vadd.f32 %v948_v58, %v3488_v39  ;;  %v950_v36 = vpop.f32.mrb[34].mxu0 }
 0x1fd   : > { %5244 = vst [vmem:[#allocation37_spill] sm:$0xff] %v3821_v34  ;;  %vm5109_vm15 = vcmp.gt.f32.partialorder %v3821_v34, %v3493_v40  ;;  %v3829_v54 = vadd.f32 %v950_v36, %v3485_v38  ;;  %v952_v49 = vpop.f32.mrb[35].mxu0 }
 0x1fe   : > { %5245 = vst [vmem:[#allocation38_spill] sm:$0xff] %v3824_v53  ;;  %v1133_v41 = vsel %vm5109_vm15, %v3821_v34, 0.0  ;;  %vm5120_vm14 = vcmp.gt.f32.partialorder %v3824_v53, %v3496_v42  ;;  %v3838_v58 = vadd.f32 %v952_v49, %v3488_v39 }
 0x1ff   : > { %5246 = vst [vmem:[#allocation39_spill] sm:$0xff] %v3829_v54  ;;  %1197 = vst [vmem:[%s3518_s21 + $0x100] sm:$0xff] %v1133_v41  ;;  %v1134_v32 = vsel %vm5120_vm14, %v3824_v53, 0.0  ;;  %vm5116_vm12 = vcmp.gt.f32.partialorder %v3829_v54, %v3493_v40 }
 0x200   : > { %5247 = vst [vmem:[#allocation40_spill] sm:$0xff] %v3838_v58  ;;  %1198 = vst [vmem:[%s3518_s21 + $0x108] sm:$0xff] %v1134_v32  ;;  %v1135_v36 = vsel %vm5116_vm12, %v3829_v54, 0.0  ;;  %vm5119_vm15 = vcmp.gt.f32.partialorder %v3838_v58, %v3496_v42 }
 0x201   : > { %1199 = vst [vmem:[%s3518_s21 + $0x110] sm:$0xff] %v1135_v36  ;;  %v1136_v49 = vsel %vm5119_vm15, %v3838_v58, 0.0 }
 0x202   : > { %1200 = vst [vmem:[%s3518_s21 + $0x118] sm:$0xff] %v1136_v49  ;;  %v956_v41 = vpop.f32.mrb[36].mxu0 }
 0x203   : > { %v3861_v32 = vadd.f32 %v956_v41, %v3485_v38  ;;  %v958_v34 = vpop.f32.mrb[37].mxu0 }
 0x204   : > { %v3864_v54 = vadd.f32 %v958_v34, %v3488_v39  ;;  %v960_v53 = vpop.f32.mrb[38].mxu0 }
 0x205   : > { %5248 = vst [vmem:[#allocation41_spill] sm:$0xff] %v3861_v32  ;;  %vm5121_vm12 = vcmp.gt.f32.partialorder %v3861_v32, %v3493_v40  ;;  %v3869_v36 = vadd.f32 %v960_v53, %v3485_v38  ;;  %v962_v58 = vpop.f32.mrb[39].mxu0 }
 0x206   : > { %5249 = vst [vmem:[#allocation42_spill] sm:$0xff] %v3864_v54  ;;  %v1137_v49 = vsel %vm5121_vm12, %v3861_v32, 0.0  ;;  %vm5132_vm15 = vcmp.gt.f32.partialorder %v3864_v54, %v3496_v42  ;;  %v3878_v34 = vadd.f32 %v962_v58, %v3488_v39 }
 0x207   : > { %5250 = vst [vmem:[#allocation43_spill] sm:$0xff] %v3869_v36  ;;  %1201 = vst [vmem:[%s3518_s21 + $0x120] sm:$0xff] %v1137_v49  ;;  %v1138_v41 = vsel %vm5132_vm15, %v3864_v54, 0.0  ;;  %vm5128_vm14 = vcmp.gt.f32.partialorder %v3869_v36, %v3493_v40 }
 0x208   : > { %5251 = vst [vmem:[#allocation44_spill] sm:$0xff] %v3878_v34  ;;  %1202 = vst [vmem:[%s3518_s21 + $0x128] sm:$0xff] %v1138_v41  ;;  %v1139_v53 = vsel %vm5128_vm14, %v3869_v36, 0.0  ;;  %vm5131_vm12 = vcmp.gt.f32.partialorder %v3878_v34, %v3496_v42 }
 0x209   : > { %1203 = vst [vmem:[%s3518_s21 + $0x130] sm:$0xff] %v1139_v53  ;;  %v1140_v58 = vsel %vm5131_vm12, %v3878_v34, 0.0 }
 0x20a   : > { %1204 = vst [vmem:[%s3518_s21 + $0x138] sm:$0xff] %v1140_v58  ;;  %v966_v49 = vpop.f32.mrb[40].mxu0 }
 0x20b   : > { %v3901_v41 = vadd.f32 %v966_v49, %v3485_v38  ;;  %v968_v32 = vpop.f32.mrb[41].mxu0 }
 0x20c   : > { %v3904_v36 = vadd.f32 %v968_v32, %v3488_v39  ;;  %v970_v54 = vpop.f32.mrb[42].mxu0 }
 0x20d   : > { %5252 = vst [vmem:[#allocation45_spill] sm:$0xff] %v3901_v41  ;;  %vm5133_vm14 = vcmp.gt.f32.partialorder %v3901_v41, %v3493_v40  ;;  %v3909_v53 = vadd.f32 %v970_v54, %v3485_v38  ;;  %v972_v34 = vpop.f32.mrb[43].mxu0 }
 0x20e   : > { %5253 = vst [vmem:[#allocation46_spill] sm:$0xff] %v3904_v36  ;;  %v1141_v58 = vsel %vm5133_vm14, %v3901_v41, 0.0  ;;  %vm5144_vm12 = vcmp.gt.f32.partialorder %v3904_v36, %v3496_v42  ;;  %v3918_v32 = vadd.f32 %v972_v34, %v3488_v39 }
 0x20f   : > { %5254 = vst [vmem:[#allocation47_spill] sm:$0xff] %v3909_v53  ;;  %1205 = vst [vmem:[%s3518_s21 + $0x140] sm:$0xff] %v1141_v58  ;;  %v1142_v49 = vsel %vm5144_vm12, %v3904_v36, 0.0  ;;  %vm5140_vm15 = vcmp.gt.f32.partialorder %v3909_v53, %v3493_v40 }
 0x210   : > { %5255 = vst [vmem:[#allocation48_spill] sm:$0xff] %v3918_v32  ;;  %1206 = vst [vmem:[%s3518_s21 + $0x148] sm:$0xff] %v1142_v49  ;;  %v1143_v54 = vsel %vm5140_vm15, %v3909_v53, 0.0  ;;  %vm5143_vm14 = vcmp.gt.f32.partialorder %v3918_v32, %v3496_v42 }
 0x211   : > { %1207 = vst [vmem:[%s3518_s21 + $0x150] sm:$0xff] %v1143_v54  ;;  %v1144_v34 = vsel %vm5143_vm14, %v3918_v32, 0.0 }
 0x212   : > { %1208 = vst [vmem:[%s3518_s21 + $0x158] sm:$0xff] %v1144_v34  ;;  %v976_v58 = vpop.f32.mrb[44].mxu0 }
 0x213   : > { %v3941_v49 = vadd.f32 %v976_v58, %v3485_v38  ;;  %v978_v41 = vpop.f32.mrb[45].mxu0 }
 0x214   : > { %v3944_v53 = vadd.f32 %v978_v41, %v3488_v39  ;;  %v980_v36 = vpop.f32.mrb[46].mxu0 }
 0x215   : > { %5256 = vst [vmem:[#allocation49_spill] sm:$0xff] %v3941_v49  ;;  %vm5145_vm15 = vcmp.gt.f32.partialorder %v3941_v49, %v3493_v40  ;;  %v3949_v54 = vadd.f32 %v980_v36, %v3485_v38  ;;  %v982_v32 = vpop.f32.mrb[47].mxu0 }
 0x216   : > { %5257 = vst [vmem:[#allocation50_spill] sm:$0xff] %v3944_v53  ;;  %v1145_v34 = vsel %vm5145_vm15, %v3941_v49, 0.0  ;;  %vm5156_vm14 = vcmp.gt.f32.partialorder %v3944_v53, %v3496_v42  ;;  %v3958_v41 = vadd.f32 %v982_v32, %v3488_v39 }
 0x217   : > { %5258 = vst [vmem:[#allocation51_spill] sm:$0xff] %v3949_v54  ;;  %1209 = vst [vmem:[%s3518_s21 + $0x160] sm:$0xff] %v1145_v34  ;;  %v1146_v58 = vsel %vm5156_vm14, %v3944_v53, 0.0  ;;  %vm5152_vm12 = vcmp.gt.f32.partialorder %v3949_v54, %v3493_v40 }
 0x218   : > { %5259 = vst [vmem:[#allocation52_spill] sm:$0xff] %v3958_v41  ;;  %1210 = vst [vmem:[%s3518_s21 + $0x168] sm:$0xff] %v1146_v58  ;;  %v1147_v36 = vsel %vm5152_vm12, %v3949_v54, 0.0  ;;  %vm5155_vm15 = vcmp.gt.f32.partialorder %v3958_v41, %v3496_v42 }
 0x219   : > { %1211 = vst [vmem:[%s3518_s21 + $0x170] sm:$0xff] %v1147_v36  ;;  %v1148_v32 = vsel %vm5155_vm15, %v3958_v41, 0.0 }
 0x21a   : > { %1212 = vst [vmem:[%s3518_s21 + $0x178] sm:$0xff] %v1148_v32  ;;  %v986_v34 = vpop.f32.mrb[48].mxu0 }
 0x21b   : > { %v3981_v58 = vadd.f32 %v986_v34, %v3485_v38  ;;  %v988_v49 = vpop.f32.mrb[49].mxu0 }
 0x21c   : > { %v3984_v54 = vadd.f32 %v988_v49, %v3488_v39  ;;  %v990_v53 = vpop.f32.mrb[50].mxu0 }
 0x21d   : > { %5260 = vst [vmem:[#allocation53_spill] sm:$0xff] %v3981_v58  ;;  %vm5157_vm12 = vcmp.gt.f32.partialorder %v3981_v58, %v3493_v40  ;;  %v3989_v36 = vadd.f32 %v990_v53, %v3485_v38  ;;  %v992_v41 = vpop.f32.mrb[51].mxu0 }
 0x21e   : > { %5261 = vst [vmem:[#allocation54_spill] sm:$0xff] %v3984_v54  ;;  %v1149_v32 = vsel %vm5157_vm12, %v3981_v58, 0.0  ;;  %vm5168_vm15 = vcmp.gt.f32.partialorder %v3984_v54, %v3496_v42  ;;  %v3998_v49 = vadd.f32 %v992_v41, %v3488_v39 }
 0x21f   : > { %5262 = vst [vmem:[#allocation55_spill] sm:$0xff] %v3989_v36  ;;  %1213 = vst [vmem:[%s3518_s21 + $0x180] sm:$0xff] %v1149_v32  ;;  %v1150_v34 = vsel %vm5168_vm15, %v3984_v54, 0.0  ;;  %vm5164_vm14 = vcmp.gt.f32.partialorder %v3989_v36, %v3493_v40 }
 0x220   : > { %5263 = vst [vmem:[#allocation56_spill] sm:$0xff] %v3998_v49  ;;  %1214 = vst [vmem:[%s3518_s21 + $0x188] sm:$0xff] %v1150_v34  ;;  %v1151_v53 = vsel %vm5164_vm14, %v3989_v36, 0.0  ;;  %vm5167_vm12 = vcmp.gt.f32.partialorder %v3998_v49, %v3496_v42 }
 0x221   : > { %1215 = vst [vmem:[%s3518_s21 + $0x190] sm:$0xff] %v1151_v53  ;;  %v1152_v41 = vsel %vm5167_vm12, %v3998_v49, 0.0 }
 0x222   : > { %1216 = vst [vmem:[%s3518_s21 + $0x198] sm:$0xff] %v1152_v41  ;;  %v996_v32 = vpop.f32.mrb[52].mxu0 }
 0x223   : > { %v4021_v34 = vadd.f32 %v996_v32, %v3485_v38  ;;  %v998_v58 = vpop.f32.mrb[53].mxu0 }
 0x224   : > { %v4024_v36 = vadd.f32 %v998_v58, %v3488_v39  ;;  %v1000_v54 = vpop.f32.mrb[54].mxu0 }
 0x225   : > { %5264 = vst [vmem:[#allocation57_spill] sm:$0xff] %v4021_v34  ;;  %vm5169_vm14 = vcmp.gt.f32.partialorder %v4021_v34, %v3493_v40  ;;  %v4029_v53 = vadd.f32 %v1000_v54, %v3485_v38  ;;  %v1002_v49 = vpop.f32.mrb[55].mxu0 }
 0x226   : > { %5265 = vst [vmem:[#allocation58_spill] sm:$0xff] %v4024_v36  ;;  %v1153_v41 = vsel %vm5169_vm14, %v4021_v34, 0.0  ;;  %vm5180_vm12 = vcmp.gt.f32.partialorder %v4024_v36, %v3496_v42  ;;  %v4038_v58 = vadd.f32 %v1002_v49, %v3488_v39 }
 0x227   : > { %5266 = vst [vmem:[#allocation59_spill] sm:$0xff] %v4029_v53  ;;  %1217 = vst [vmem:[%s3518_s21 + $0x1a0] sm:$0xff] %v1153_v41  ;;  %v1154_v32 = vsel %vm5180_vm12, %v4024_v36, 0.0  ;;  %vm5176_vm15 = vcmp.gt.f32.partialorder %v4029_v53, %v3493_v40 }
 0x228   : > { %5267 = vst [vmem:[#allocation60_spill] sm:$0xff] %v4038_v58  ;;  %1218 = vst [vmem:[%s3518_s21 + $0x1a8] sm:$0xff] %v1154_v32  ;;  %v1155_v54 = vsel %vm5176_vm15, %v4029_v53, 0.0  ;;  %vm5179_vm14 = vcmp.gt.f32.partialorder %v4038_v58, %v3496_v42 }
 0x229   : > { %1219 = vst [vmem:[%s3518_s21 + $0x1b0] sm:$0xff] %v1155_v54  ;;  %v1156_v49 = vsel %vm5179_vm14, %v4038_v58, 0.0 }
 0x22a   : > { %1220 = vst [vmem:[%s3518_s21 + $0x1b8] sm:$0xff] %v1156_v49  ;;  %v1006_v41 = vpop.f32.mrb[56].mxu0 }
 0x22b   : > { %v4061_v32 = vadd.f32 %v1006_v41, %v3485_v38  ;;  %v1008_v34 = vpop.f32.mrb[57].mxu0 }
 0x22c   : > { %v4064_v53 = vadd.f32 %v1008_v34, %v3488_v39  ;;  %v1010_v36 = vpop.f32.mrb[58].mxu0 }
 0x22d   : > { %5268 = vst [vmem:[#allocation61_spill] sm:$0xff] %v4061_v32  ;;  %vm5181_vm15 = vcmp.gt.f32.partialorder %v4061_v32, %v3493_v40  ;;  %v4069_v54 = vadd.f32 %v1010_v36, %v3485_v38  ;;  %v1012_v58 = vpop.f32.mrb[59].mxu0 }
 0x22e   : > { %5269 = vst [vmem:[#allocation62_spill] sm:$0xff] %v4064_v53  ;;  %v1157_v49 = vsel %vm5181_vm15, %v4061_v32, 0.0  ;;  %vm5192_vm14 = vcmp.gt.f32.partialorder %v4064_v53, %v3496_v42  ;;  %v4078_v34 = vadd.f32 %v1012_v58, %v3488_v39 }
 0x22f   : > { %5270 = vst [vmem:[#allocation63_spill] sm:$0xff] %v4069_v54  ;;  %1221 = vst [vmem:[%s3518_s21 + $0x1c0] sm:$0xff] %v1157_v49  ;;  %v1158_v41 = vsel %vm5192_vm14, %v4064_v53, 0.0  ;;  %vm5188_vm12 = vcmp.gt.f32.partialorder %v4069_v54, %v3493_v40 }
 0x230   : > { %5271 = vst [vmem:[#allocation64_spill] sm:$0xff] %v4078_v34  ;;  %1222 = vst [vmem:[%s3518_s21 + $0x1c8] sm:$0xff] %v1158_v41  ;;  %v1159_v36 = vsel %vm5188_vm12, %v4069_v54, 0.0  ;;  %vm5191_vm15 = vcmp.gt.f32.partialorder %v4078_v34, %v3496_v42 }
 0x231   : > { %1223 = vst [vmem:[%s3518_s21 + $0x1d0] sm:$0xff] %v1159_v36  ;;  %v1160_v58 = vsel %vm5191_vm15, %v4078_v34, 0.0 }
 0x232   : > { %1224 = vst [vmem:[%s3518_s21 + $0x1d8] sm:$0xff] %v1160_v58  ;;  %v1016_v49 = vpop.f32.mrb[60].mxu0 }
 0x233   : > { %v4101_v41 = vadd.f32 %v1016_v49, %v3485_v38  ;;  %v1018_v32 = vpop.f32.mrb[61].mxu0 }
 0x234   : > { %v4104_v54 = vadd.f32 %v1018_v32, %v3488_v39  ;;  %v1020_v53 = vpop.f32.mrb[62].mxu0  ;;  %1232 = sbr.rel (%p2367_p2) target bundleno = 600 (0x258), region = 60 }
 0x235   : > { %vm5193_vm12 = vcmp.gt.f32.partialorder %v4101_v41, %v3493_v40  ;;  %v4109_v36 = vadd.f32 %v1020_v53, %v3485_v38  ;;  %v1022_v34 = vpop.f32.mrb[63].mxu0  ;;  %v2999_v53 = vmov (!%p2367_p2), 0.0  }
 0x236   : > { %v1161_v58 = vsel %vm5193_vm12, %v4101_v41, 0.0  ;;  %vm1098_vm15 = vcmp.gt.f32.partialorder %v4104_v54, %v3496_v42  ;;  %v4118_v32 = vadd.f32 %v1022_v34, %v3488_v39  ;;  %1233 = vst [vmem:[%s4142_s6] sm:$0xff] (!%p2367_p2), %v2999_v53  ;;  %1234 = vst [vmem:[%s4142_s6 + $0x8] sm:$0xff] (!%p2367_p2), %v2999_v53 }
 0x237   : > { %1225 = vst [vmem:[%s3518_s21 + $0x1e0] sm:$0xff] %v1161_v58  ;;  %v1162_v49 = vsel %vm1098_vm15, %v4104_v54, 0.0  ;;  %vm5194_vm14 = vcmp.gt.f32.partialorder %v4109_v36, %v3493_v40  ;;  %1235 = vst [vmem:[%s4142_s6 + $0x10] sm:$0xff] (!%p2367_p2), %v2999_v53 }
 0x238   : > { %1226 = vst [vmem:[%s3518_s21 + $0x1e8] sm:$0xff] %v1162_v49  ;;  %v1163_v38 = vsel %vm5194_vm14, %v4109_v36, 0.0  ;;  %vm1100_vm12 = vcmp.gt.f32.partialorder %v4118_v32, %v3496_v42  ;;  %1236 = vst [vmem:[%s4142_s6 + $0x18] sm:$0xff] (!%p2367_p2), %v2999_v53 }
 0x239   : > { %1227 = vst [vmem:[%s3518_s21 + $0x1f0] sm:$0xff] %v1163_v38  ;;  %v1164_v39 = vsel %vm1100_vm12, %v4118_v32, 0.0  ;;  %1237 = vst [vmem:[%s4142_s6 + $0x20] sm:$0xff] (!%p2367_p2), %v2999_v53 }
 0x23a   : > { %1228 = vst [vmem:[%s3518_s21 + $0x1f8] sm:$0xff] %v1164_v39  ;;  %1238 = vst [vmem:[%s4142_s6 + $0x28] sm:$0xff] (!%p2367_p2), %v2999_v53 }
 0x23b   : > { %1239 = vst [vmem:[%s4142_s6 + $0x30] sm:$0xff] %v2999_v53  ;;  %1240 = vst [vmem:[%s4142_s6 + $0x38] sm:$0xff] %v2999_v53 }
 0x23c   : > { %1241 = vst [vmem:[%s4142_s6 + $0x40] sm:$0xff] %v2999_v53  ;;  %1242 = vst [vmem:[%s4142_s6 + $0x48] sm:$0xff] %v2999_v53 }
 0x23d   : > { %1243 = vst [vmem:[%s4142_s6 + $0x50] sm:$0xff] %v2999_v53  ;;  %1244 = vst [vmem:[%s4142_s6 + $0x58] sm:$0xff] %v2999_v53 }
 0x23e   : > { %1245 = vst [vmem:[%s4142_s6 + $0x60] sm:$0xff] %v2999_v53  ;;  %1246 = vst [vmem:[%s4142_s6 + $0x68] sm:$0xff] %v2999_v53 }
 0x23f   : > { %1247 = vst [vmem:[%s4142_s6 + $0x70] sm:$0xff] %v2999_v53  ;;  %1248 = vst [vmem:[%s4142_s6 + $0x78] sm:$0xff] %v2999_v53 }
 0x240   : > { %1249 = vst [vmem:[%s4142_s6 + $0x80] sm:$0xff] %v2999_v53  ;;  %1250 = vst [vmem:[%s4142_s6 + $0x88] sm:$0xff] %v2999_v53 }
 0x241   : > { %1251 = vst [vmem:[%s4142_s6 + $0x90] sm:$0xff] %v2999_v53  ;;  %1252 = vst [vmem:[%s4142_s6 + $0x98] sm:$0xff] %v2999_v53 }
 0x242   : > { %1253 = vst [vmem:[%s4142_s6 + $0xa0] sm:$0xff] %v2999_v53  ;;  %1254 = vst [vmem:[%s4142_s6 + $0xa8] sm:$0xff] %v2999_v53 }
 0x243   : > { %1255 = vst [vmem:[%s4142_s6 + $0xb0] sm:$0xff] %v2999_v53  ;;  %1256 = vst [vmem:[%s4142_s6 + $0xb8] sm:$0xff] %v2999_v53 }
 0x244   : > { %1257 = vst [vmem:[%s4142_s6 + $0xc0] sm:$0xff] %v2999_v53  ;;  %1258 = vst [vmem:[%s4142_s6 + $0xc8] sm:$0xff] %v2999_v53 }
 0x245   : > { %1259 = vst [vmem:[%s4142_s6 + $0xd0] sm:$0xff] %v2999_v53  ;;  %1260 = vst [vmem:[%s4142_s6 + $0xd8] sm:$0xff] %v2999_v53 }
 0x246   : > { %1261 = vst [vmem:[%s4142_s6 + $0xe0] sm:$0xff] %v2999_v53  ;;  %1262 = vst [vmem:[%s4142_s6 + $0xe8] sm:$0xff] %v2999_v53 }
 0x247   : > { %1263 = vst [vmem:[%s4142_s6 + $0xf0] sm:$0xff] %v2999_v53  ;;  %1264 = vst [vmem:[%s4142_s6 + $0xf8] sm:$0xff] %v2999_v53 }
 0x248   : > { %1265 = vst [vmem:[%s4142_s6 + $0x100] sm:$0xff] %v2999_v53  ;;  %1266 = vst [vmem:[%s4142_s6 + $0x108] sm:$0xff] %v2999_v53 }
 0x249   : > { %1267 = vst [vmem:[%s4142_s6 + $0x110] sm:$0xff] %v2999_v53  ;;  %1268 = vst [vmem:[%s4142_s6 + $0x118] sm:$0xff] %v2999_v53 }
 0x24a   : > { %1269 = vst [vmem:[%s4142_s6 + $0x120] sm:$0xff] %v2999_v53  ;;  %1270 = vst [vmem:[%s4142_s6 + $0x128] sm:$0xff] %v2999_v53 }
 0x24b   : > { %1271 = vst [vmem:[%s4142_s6 + $0x130] sm:$0xff] %v2999_v53  ;;  %1272 = vst [vmem:[%s4142_s6 + $0x138] sm:$0xff] %v2999_v53 }
 0x24c   : > { %1273 = vst [vmem:[%s4142_s6 + $0x140] sm:$0xff] %v2999_v53  ;;  %1274 = vst [vmem:[%s4142_s6 + $0x148] sm:$0xff] %v2999_v53 }
 0x24d   : > { %1275 = vst [vmem:[%s4142_s6 + $0x150] sm:$0xff] %v2999_v53  ;;  %1276 = vst [vmem:[%s4142_s6 + $0x158] sm:$0xff] %v2999_v53 }
 0x24e   : > { %1277 = vst [vmem:[%s4142_s6 + $0x160] sm:$0xff] %v2999_v53  ;;  %1278 = vst [vmem:[%s4142_s6 + $0x168] sm:$0xff] %v2999_v53 }
 0x24f   : > { %1279 = vst [vmem:[%s4142_s6 + $0x170] sm:$0xff] %v2999_v53  ;;  %1280 = vst [vmem:[%s4142_s6 + $0x178] sm:$0xff] %v2999_v53 }
 0x250   : > { %1281 = vst [vmem:[%s4142_s6 + $0x180] sm:$0xff] %v2999_v53  ;;  %1282 = vst [vmem:[%s4142_s6 + $0x188] sm:$0xff] %v2999_v53 }
 0x251   : > { %1283 = vst [vmem:[%s4142_s6 + $0x190] sm:$0xff] %v2999_v53  ;;  %1284 = vst [vmem:[%s4142_s6 + $0x198] sm:$0xff] %v2999_v53 }
 0x252   : > { %1285 = vst [vmem:[%s4142_s6 + $0x1a0] sm:$0xff] %v2999_v53  ;;  %1286 = vst [vmem:[%s4142_s6 + $0x1a8] sm:$0xff] %v2999_v53 }
 0x253   : > { %1287 = vst [vmem:[%s4142_s6 + $0x1b0] sm:$0xff] %v2999_v53  ;;  %1288 = vst [vmem:[%s4142_s6 + $0x1b8] sm:$0xff] %v2999_v53 }
 0x254   : > { %1289 = vst [vmem:[%s4142_s6 + $0x1c0] sm:$0xff] %v2999_v53  ;;  %1290 = vst [vmem:[%s4142_s6 + $0x1c8] sm:$0xff] %v2999_v53 }
 0x255   : > { %1291 = vst [vmem:[%s4142_s6 + $0x1d0] sm:$0xff] %v2999_v53  ;;  %1292 = vst [vmem:[%s4142_s6 + $0x1d8] sm:$0xff] %v2999_v53 }
 0x256   : > { %1293 = vst [vmem:[%s4142_s6 + $0x1e0] sm:$0xff] %v2999_v53  ;;  %1294 = vst [vmem:[%s4142_s6 + $0x1e8] sm:$0xff] %v2999_v53 }
 0x257   : > { %1295 = vst [vmem:[%s4142_s6 + $0x1f0] sm:$0xff] %v2999_v53  ;;  %1296 = vst [vmem:[%s4142_s6 + $0x1f8] sm:$0xff] %v2999_v53 }
 0x258 PF: > { %v2369_v34 = vcombine.high %v3309_v0, %v3312_v1  ;;  %v2368_v58 = vcombine.low %v3309_v0, %v3312_v1  ;;  %v2371_v49 = vcombine.high %v3315_v2, %v3318_v3  ;;  %v2370_v38 = vcombine.low %v3315_v2, %v3318_v3  ;;  %vm2400_vm14 = vmpackc.low %vm1040_vm3, %vm1038_vm1  ;;  %p2496_p10 = scmp.ne.s32.totalorder %s2974_s30, 1 }
 0x259   : > { %v2373_v39 = vcombine.high %v3321_v4, %v3324_v5  ;;  %v2372_v53 = vcombine.low %v3321_v4, %v3324_v5  ;;  %v2375_v0 = vcombine.high %v3327_v6, %v3330_v7  ;;  %v2401_v1 = vpack.c.bf16 %v3516_v50, %v3502_v45  ;;  %vm2403_vm1 = vmpackc.low %vm1039_vm2, %vm1037_vm0  ;;  %s5361_s7 = sld [smem:[#allocation68_spill]] (!%p2496_p10) }
 0x25a   : > { %1553 = vmatprep.subr.bf16.mxu1 %v2369_v34  ;;  %v2374_v2 = vcombine.low %v3327_v6, %v3330_v7  ;;  %v2377_v3 = vcombine.high %v3333_v8, %v3336_v9  ;;  %v2376_v4 = vcombine.low %v3333_v8, %v3336_v9  ;;  %v2379_v5 = vcombine.high %v3339_v10, %v3342_v11  ;;  %vm2406_vm3 = vmpackc.low %vm1044_vm7, %vm1042_vm5  ;;  %v5300_v34 = vld [vmem:[#allocation35_spill] sm:$0xff] }
 0x25b   : > { %1554 = vmatpush1.bf16.msra.mxu1 %v2368_v58  ;;  %2402 = vmatprep.mubr.msk.bf16.mxu1 %vm2400_vm14, %v2401_v1  ;;  %v2378_v45 = vcombine.low %v3339_v10, %v3342_v11  ;;  %v2381_v6 = vcombine.high %v3345_v12, %v3348_v13  ;;  %v2380_v7 = vcombine.low %v3345_v12, %v3348_v13  ;;  %vm2409_vm0 = vmpackc.low %vm1043_vm6, %vm1041_vm4 }
 0x25c   : > { %1555 = vmatprep.subr.bf16.mxu1 %v2371_v49  ;;  %v2383_v8 = vcombine.high %v3351_v14, %v3354_v15  ;;  %v2382_v9 = vcombine.low %v3351_v14, %v3354_v15  ;;  %v2385_v10 = vcombine.high %v3357_v16, %v3360_v17  ;;  %v2384_v11 = vcombine.low %v3357_v16, %v3360_v17  ;;  %vm2412_vm2 = vmpackc.low %vm1048_vm11, %vm1046_vm9  ;;  %v5303_v49 = vld [vmem:[#allocation38_spill] sm:$0xff] }
 0x25d   : > { %v2387_v12 = vcombine.high %v3363_v18, %v3366_v19  ;;  %v2386_v13 = vcombine.low %v3363_v18, %v3366_v19  ;;  %v2389_v14 = vcombine.high %v3369_v20, %v3372_v21  ;;  %v2388_v15 = vcombine.low %v3369_v20, %v3372_v21  ;;  %vm2415_vm4 = vmpackc.low %vm1047_vm10, %vm1045_vm8 }
 0x25e   : > { %v2391_v16 = vcombine.high %v3375_v22, %v3378_v23  ;;  %v2390_v17 = vcombine.low %v3375_v22, %v3378_v23  ;;  %v2393_v18 = vcombine.high %v3381_v24, %v3384_v25  ;;  %v2392_v19 = vcombine.low %v3381_v24, %v3384_v25 }
 0x25f   : > { %1556 = vmatpush1.bf16.msra.mxu1 %v2370_v38  ;;  %v2395_v20 = vcombine.high %v3387_v26, %v3390_v27  ;;  %v2394_v21 = vcombine.low %v3387_v26, %v3390_v27  ;;  %v2397_v22 = vcombine.high %v3393_v28, %v3396_v29  ;;  %v2396_v23 = vcombine.low %v3393_v28, %v3396_v29  ;;  %v5304_v38 = vld [vmem:[#allocation40_spill] sm:$0xff] }
 0x260   : > { %1557 = vmatprep.subr.bf16.mxu1 %v2373_v39  ;;  %v2399_v24 = vcombine.high %v3399_v30, %v3402_v31  ;;  %v2398_v25 = vcombine.low %v3399_v30, %v3402_v31  ;;  %v2404_v26 = vpack.c.bf16 %v3507_v47, %v3499_v43  ;;  %v2407_v27 = vpack.c.bf16 %v3558_v62, %v3544_v57  ;;  %v5280_v57 = vld [vmem:[#allocation28_spill] sm:$0xff]  ;;  %v5283_v62 = vld [vmem:[#allocation25_spill] sm:$0xff] }
 0x261   : > { %v2410_v28 = vpack.c.bf16 %v3549_v59, %v3541_v55  ;;  %v2413_v29 = vpack.c.bf16 %v3598_v52, %v3584_v44  ;;  %v2416_v30 = vpack.c.bf16 %v3589_v48, %v3581_v37  ;;  %v2419_v31 = vpack.c.bf16 %v3638_v46, %v3624_v63  ;;  %v5279_v55 = vld [vmem:[#allocation26_spill] sm:$0xff]  ;;  %v5284_v37 = vld [vmem:[#allocation27_spill] sm:$0xff]  ;;  %v5288_v52 = vld [vmem:[#allocation32_spill] sm:$0xff] }
 0x262   : > { %vm5272_vm5 = vcmp.gt.f32.partialorder %v3638_v46, %v3496_v42  ;;  %v2422_v43 = vpack.c.bf16 %v3629_v33, %v3621_v60  ;;  %vm5273_vm7 = vcmp.gt.f32.partialorder %v3621_v60, %v3493_v40  ;;  %vm5274_vm8 = vcmp.gt.f32.partialorder %v3629_v33, %v3493_v40  ;;  %v5287_v48 = vld [vmem:[#allocation30_spill] sm:$0xff]  ;;  %v5291_v63 = vld [vmem:[#allocation29_spill] sm:$0xff]  ;;  %v5292_v33 = vld [vmem:[#allocation31_spill] sm:$0xff] }
 0x263   : > { %1558 = vmatpush1.bf16.msra.mxu1 %v2372_v53  ;;  %vm2418_vm6 = vmpackc.low %vm5272_vm5, %vm1050_vm13  ;;  %v2425_v47 = vpack.c.bf16 %v3678_v51, %v3664_v61  ;;  %vm5275_vm10 = vcmp.gt.f32.partialorder %v3664_v61, %v3496_v42  ;;  %vm5276_vm11 = vcmp.gt.f32.partialorder %v3678_v51, %v3496_v42  ;;  %v2428_v50 = vpack.c.bf16 %v3669_v35, %v3661_v56  ;;  %v5296_v61 = vld [vmem:[#allocation36_spill] sm:$0xff]  ;;  %v5299_v51 = vld [vmem:[#allocation33_spill] sm:$0xff] }
 0x264   : > { %1559 = vmatprep.subr.bf16.mxu1 %v2375_v0  ;;  %vm2421_vm9 = vmpackc.low %vm5274_vm8, %vm5273_vm7  ;;  %vm5277_vm14 = vcmp.gt.f32.partialorder %v3661_v56, %v3493_v40  ;;  %v2431_v59 = vpack.c.bf16 %v5280_v57, %v5279_v55  ;;  %v2434_v44 = vpack.c.bf16 %v5284_v37, %v5283_v62  ;;  %vm5285_vm5 = vcmp.gt.f32.partialorder %v5283_v62, %v3493_v40  ;;  %v5295_v56 = vld [vmem:[#allocation34_spill] sm:$0xff]  ;;  %v5307_v53 = vld [vmem:[#allocation37_spill] sm:$0xff] }
 0x265   : > { %vm2424_vm13 = vmpackc.low %vm5276_vm11, %vm5275_vm10  ;;  %v2437_v60 = vpack.c.bf16 %v5288_v52, %v5287_v48  ;;  %vm5289_vm8 = vcmp.gt.f32.partialorder %v5287_v48, %v3496_v42  ;;  %v2440_v46 = vpack.c.bf16 %v5292_v33, %v5291_v63  ;;  %vm5293_vm11 = vcmp.gt.f32.partialorder %v5291_v63, %v3493_v40  ;;  %v5308_v0 = vld [vmem:[#allocation39_spill] sm:$0xff] }
 0x266   : > { %v2446_v58 = vpack.c.bf16 %v5300_v34, %v5299_v51  ;;  %v2449_v39 = vpack.c.bf16 %v5304_v38, %v5303_v49  ;;  %v2452_v1 = vpack.c.bf16 %v5308_v0, %v5307_v53  ;;  %v2494_v62 = vpack.c.bf16 %v4109_v36, %v4101_v41 }
 0x267   : > { %1560 = vmatpush1.bf16.msra.mxu1 %v2374_v2  ;;  %v5311_v2 = vld [vmem:[#allocation42_spill] sm:$0xff] }
 0x268   : > { %1561 = vmatprep.subr.bf16.mxu1 %v2377_v3  ;;  %v5312_v3 = vld [vmem:[#allocation44_spill] sm:$0xff] }
 0x26b   : > { %1562 = vmatpush1.bf16.msra.mxu1 %v2376_v4  ;;  %v2455_v4 = vpack.c.bf16 %v5312_v3, %v5311_v2 }
 0x26c   : > { %1563 = vmatprep.subr.bf16.mxu1 %v2379_v5  ;;  %v5315_v5 = vld [vmem:[#allocation41_spill] sm:$0xff] }
 0x26f   : > { %1564 = vmatpush1.bf16.msra.mxu1 %v2378_v45  ;;  %v5316_v45 = vld [vmem:[#allocation43_spill] sm:$0xff] }
 0x270   : > { %1565 = vmatprep.subr.bf16.mxu1 %v2381_v6  ;;  %v2458_v6 = vpack.c.bf16 %v5316_v45, %v5315_v5 }
 0x273   : > { %1566 = vmatpush1.bf16.msra.mxu1 %v2380_v7  ;;  %v5319_v7 = vld [vmem:[#allocation46_spill] sm:$0xff] }
 0x274   : > { %1567 = vmatprep.subr.bf16.mxu1 %v2383_v8  ;;  %v5320_v8 = vld [vmem:[#allocation48_spill] sm:$0xff] }
 0x277   : > { %1568 = vmatpush1.bf16.msra.mxu1 %v2382_v9  ;;  %v2461_v9 = vpack.c.bf16 %v5320_v8, %v5319_v7 }
 0x278   : > { %1569 = vmatprep.subr.bf16.mxu1 %v2385_v10  ;;  %v5323_v10 = vld [vmem:[#allocation45_spill] sm:$0xff] }
 0x27b   : > { %1570 = vmatpush1.bf16.msra.mxu1 %v2384_v11  ;;  %v5324_v11 = vld [vmem:[#allocation47_spill] sm:$0xff] }
 0x27c   : > { %1571 = vmatprep.subr.bf16.mxu1 %v2387_v12  ;;  %v2464_v12 = vpack.c.bf16 %v5324_v11, %v5323_v10 }
 0x27f   : > { %1572 = vmatpush1.bf16.msra.mxu1 %v2386_v13  ;;  %v5327_v13 = vld [vmem:[#allocation50_spill] sm:$0xff] }
 0x280   : > { %1573 = vmatprep.subr.bf16.mxu1 %v2389_v14  ;;  %v5328_v14 = vld [vmem:[#allocation52_spill] sm:$0xff] }
 0x283   : > { %1574 = vmatpush1.bf16.msra.mxu1 %v2388_v15  ;;  %v2467_v15 = vpack.c.bf16 %v5328_v14, %v5327_v13 }
 0x284   : > { %1575 = vmatprep.subr.bf16.mxu1 %v2391_v16  ;;  %v5331_v16 = vld [vmem:[#allocation49_spill] sm:$0xff] }
 0x287   : > { %1576 = vmatpush1.bf16.msra.mxu1 %v2390_v17  ;;  %v5332_v17 = vld [vmem:[#allocation51_spill] sm:$0xff] }
 0x288   : > { %1577 = vmatprep.subr.bf16.mxu1 %v2393_v18  ;;  %v2470_v18 = vpack.c.bf16 %v5332_v17, %v5331_v16 }
 0x28b   : > { %1578 = vmatpush1.bf16.msra.mxu1 %v2392_v19  ;;  %v5335_v19 = vld [vmem:[#allocation54_spill] sm:$0xff] }
 0x28c   : > { %1579 = vmatprep.subr.bf16.mxu1 %v2395_v20  ;;  %v5336_v20 = vld [vmem:[#allocation56_spill] sm:$0xff] }
 0x28f   : > { %1580 = vmatpush1.bf16.msra.mxu1 %v2394_v21  ;;  %v2473_v21 = vpack.c.bf16 %v5336_v20, %v5335_v19 }
 0x290   : > { %1581 = vmatprep.subr.bf16.mxu1 %v2397_v22  ;;  %v5339_v22 = vld [vmem:[#allocation53_spill] sm:$0xff] }
 0x293   : > { %1582 = vmatpush1.bf16.msra.mxu1 %v2396_v23  ;;  %v5340_v23 = vld [vmem:[#allocation55_spill] sm:$0xff] }
 0x294   : > { %1583 = vmatprep.subr.bf16.mxu1 %v2399_v24  ;;  %v2476_v24 = vpack.c.bf16 %v5340_v23, %v5339_v22 }
 0x297   : > { %1584 = vmatpush1.bf16.msra.mxu1 %v2398_v25  ;;  %v5343_v25 = vld [vmem:[#allocation58_spill] sm:$0xff] }
 0x29a   : > { %2405 = vmatmul.mubr.msk.bf16.vlgmr.msra.gmra.mrb[0].mxu1 %vm2403_vm1, %v2404_v26  ;;  %vm5278_vm1 = vcmp.gt.f32.partialorder %v3669_v35, %v3493_v40  ;;  %v2443_v35 = vpack.c.bf16 %v5296_v61, %v5295_v56  ;;  %v5344_v26 = vld [vmem:[#allocation60_spill] sm:$0xff] }
 0x29b   : > { %2408 = vmatprep.mubr.msk.bf16.mxu1 %vm2406_vm3, %v2407_v27  ;;  %vm2427_vm3 = vmpackc.low %vm5278_vm1, %vm5277_vm14  ;;  %vm5297_vm1 = vcmp.gt.f32.partialorder %v5295_v56, %v3496_v42  ;;  %v2479_v27 = vpack.c.bf16 %v5344_v26, %v5343_v25 }
 0x2a2   : > { %2411 = vmatmul.mubr.msk.bf16.gmra.mrb[4].mxu1 %vm2409_vm0, %v2410_v28  ;;  %vm5281_vm0 = vcmp.gt.f32.partialorder %v5279_v55, %v3496_v42  ;;  %v5347_v28 = vld [vmem:[#allocation57_spill] sm:$0xff]  ;;  %v5356_v55 = vld [vmem:[#allocation63_spill] sm:$0xff] }
 0x2a3   : > { %2414 = vmatprep.mubr.msk.bf16.mxu1 %vm2412_vm2, %v2413_v29  ;;  %vm5282_vm2 = vcmp.gt.f32.partialorder %v5280_v57, %v3496_v42  ;;  %v5348_v29 = vld [vmem:[#allocation59_spill] sm:$0xff] }
 0x2aa   : > { %2417 = vmatmul.mubr.msk.bf16.gmra.mrb[8].mxu1 %vm2415_vm4, %v2416_v30  ;;  %vm2430_vm4 = vmpackc.low %vm5282_vm2, %vm5281_vm0  ;;  %vm5301_vm2 = vcmp.gt.f32.partialorder %v5299_v51, %v3493_v40  ;;  %v2482_v30 = vpack.c.bf16 %v5348_v29, %v5347_v28 }
 0x2ab   : > { %2420 = vmatprep.mubr.msk.bf16.mxu1 %vm2418_vm6, %v2419_v31  ;;  %vm5286_vm6 = vcmp.gt.f32.partialorder %v5284_v37, %v3493_v40  ;;  %v5351_v31 = vld [vmem:[#allocation62_spill] sm:$0xff]  ;;  %v1299_v37 = vld [vmem:[%s4142_s6 + $0x10] sm:$0xff] }
 0x2ac   : > { %vm2433_vm7 = vmpackc.low %vm5286_vm6, %vm5285_vm5  ;;  %vm5305_vm6 = vcmp.gt.f32.partialorder %v5303_v49, %v3496_v42 }
 0x2b2   : > { %2423 = vmatmul.mubr.msk.bf16.gmra.mrb[12].mxu1 %vm2421_vm9, %v2422_v43  ;;  %vm5290_vm9 = vcmp.gt.f32.partialorder %v5288_v52, %v3496_v42  ;;  %v5352_v43 = vld [vmem:[#allocation64_spill] sm:$0xff]  ;;  %v1300_v52 = vld [vmem:[%s4142_s6 + $0x18] sm:$0xff] }
 0x2b3   : > { %2426 = vmatprep.mubr.msk.bf16.mxu1 %vm2424_vm13, %v2425_v47  ;;  %vm2436_vm10 = vmpackc.low %vm5290_vm9, %vm5289_vm8  ;;  %vm5294_vm13 = vcmp.gt.f32.partialorder %v5292_v33, %v3493_v40  ;;  %vm5309_vm9 = vcmp.gt.f32.partialorder %v5307_v53, %v3493_v40  ;;  %v2485_v47 = vpack.c.bf16 %v5352_v43, %v5351_v31  ;;  %v1301_v33 = vld [vmem:[%s4142_s6 + $0x20] sm:$0xff] }
 0x2b4   : > { %vm2439_vm14 = vmpackc.low %vm5294_vm13, %vm5293_vm11  ;;  %vm5313_vm13 = vcmp.gt.f32.partialorder %v5311_v2, %v3496_v42 }
 0x2ba   : > { %2429 = vmatmul.mubr.msk.bf16.gmra.mrb[16].mxu1 %vm2427_vm3, %v2428_v50  ;;  %vm5298_vm3 = vcmp.gt.f32.partialorder %v5296_v61, %v3496_v42  ;;  %v5355_v50 = vld [vmem:[#allocation61_spill] sm:$0xff] }
 0x2bb   : > { %2432 = vmatprep.mubr.msk.bf16.mxu1 %vm2430_vm4, %v2431_v59  ;;  %vm2442_vm0 = vmpackc.low %vm5298_vm3, %vm5297_vm1  ;;  %vm5302_vm4 = vcmp.gt.f32.partialorder %v5300_v34, %v3493_v40  ;;  %vm5317_vm3 = vcmp.gt.f32.partialorder %v5315_v5, %v3493_v40  ;;  %v2488_v57 = vpack.c.bf16 %v5356_v55, %v5355_v50  ;;  %v2491_v59 = vpack.c.bf16 %v4118_v32, %v4104_v54  ;;  %v1297_v54 = vld [vmem:[%s4142_s6] sm:$0xff]  ;;  %v1303_v61 = vld [vmem:[%s4142_s6 + $0x30] sm:$0xff] }
 0x2bc   : > { %vm2445_vm5 = vmpackc.low %vm5302_vm4, %vm5301_vm2  ;;  %vm5321_vm4 = vcmp.gt.f32.partialorder %v5319_v7, %v3496_v42  ;;  %v1304_v34 = vld [vmem:[%s4142_s6 + $0x38] sm:$0xff] }
 0x2c2   : > { %2435 = vmatmul.mubr.msk.bf16.gmra.mrb[20].mxu1 %vm2433_vm7, %v2434_v44  ;;  %vm5306_vm7 = vcmp.gt.f32.partialorder %v5304_v38, %v3496_v42 }
 0x2c3   : > { %2438 = vmatprep.mubr.msk.bf16.mxu1 %vm2436_vm10, %v2437_v60  ;;  %vm2448_vm8 = vmpackc.low %vm5306_vm7, %vm5305_vm6  ;;  %vm5310_vm10 = vcmp.gt.f32.partialorder %v5308_v0, %v3493_v40  ;;  %vm5325_vm7 = vcmp.gt.f32.partialorder %v5323_v10, %v3493_v40  ;;  %v1305_v0 = vld [vmem:[%s4142_s6 + $0x40] sm:$0xff] }
 0x2c4   : > { %vm2451_vm11 = vmpackc.low %vm5310_vm10, %vm5309_vm9  ;;  %vm5329_vm10 = vcmp.gt.f32.partialorder %v5327_v13, %v3496_v42 }
 0x2ca   : > { %2441 = vmatmul.mubr.msk.bf16.gmra.mrb[24].mxu1 %vm2439_vm14, %v2440_v46  ;;  %vm5314_vm14 = vcmp.gt.f32.partialorder %v5312_v3, %v3496_v42  ;;  %v1302_v46 = vld [vmem:[%s4142_s6 + $0x28] sm:$0xff]  ;;  %v1307_v3 = vld [vmem:[%s4142_s6 + $0x50] sm:$0xff] }
 0x2cb   : > { %2444 = vmatprep.mubr.msk.bf16.mxu1 %vm2442_vm0, %v2443_v35  ;;  %vm2454_vm1 = vmpackc.low %vm5314_vm14, %vm5313_vm13  ;;  %vm5318_vm0 = vcmp.gt.f32.partialorder %v5316_v45, %v3493_v40  ;;  %vm5333_vm14 = vcmp.gt.f32.partialorder %v5331_v16, %v3493_v40  ;;  %v1308_v45 = vld [vmem:[%s4142_s6 + $0x58] sm:$0xff] }
 0x2cc   : > { %vm2457_vm2 = vmpackc.low %vm5318_vm0, %vm5317_vm3  ;;  %vm5337_vm0 = vcmp.gt.f32.partialorder %v5335_v19, %v3496_v42 }
 0x2d2   : > { %2447 = vmatmul.mubr.msk.bf16.gmra.mrb[28].mxu1 %vm2445_vm5, %v2446_v58  ;;  %vm5322_vm5 = vcmp.gt.f32.partialorder %v5320_v8, %v3496_v42 }
 0x2d3   : > { %2450 = vmatprep.mubr.msk.bf16.mxu1 %vm2448_vm8, %v2449_v39  ;;  %vm2460_vm6 = vmpackc.low %vm5322_vm5, %vm5321_vm4  ;;  %vm5326_vm8 = vcmp.gt.f32.partialorder %v5324_v11, %v3493_v40  ;;  %vm5341_vm5 = vcmp.gt.f32.partialorder %v5339_v22, %v3493_v40  ;;  %v1309_v11 = vld [vmem:[%s4142_s6 + $0x60] sm:$0xff] }
 0x2d4   : > { %vm2463_vm9 = vmpackc.low %vm5326_vm8, %vm5325_vm7  ;;  %vm5345_vm8 = vcmp.gt.f32.partialorder %v5343_v25, %v3496_v42 }
 0x2da   : > { %2453 = vmatmul.mubr.msk.bf16.gmra.mrb[32].mxu1 %vm2451_vm11, %v2452_v1  ;;  %vm5330_vm11 = vcmp.gt.f32.partialorder %v5328_v14, %v3496_v42  ;;  %v1306_v1 = vld [vmem:[%s4142_s6 + $0x48] sm:$0xff]  ;;  %v1311_v14 = vld [vmem:[%s4142_s6 + $0x70] sm:$0xff] }
 0x2db   : > { %2456 = vmatprep.mubr.msk.bf16.mxu1 %vm2454_vm1, %v2455_v4  ;;  %vm2466_vm13 = vmpackc.low %vm5330_vm11, %vm5329_vm10  ;;  %vm5334_vm1 = vcmp.gt.f32.partialorder %v5332_v17, %v3493_v40  ;;  %vm5349_vm11 = vcmp.gt.f32.partialorder %v5347_v28, %v3493_v40  ;;  %v1312_v17 = vld [vmem:[%s4142_s6 + $0x78] sm:$0xff] }
 0x2dc   : > { %vm2469_vm3 = vmpackc.low %vm5334_vm1, %vm5333_vm14  ;;  %vm5353_vm1 = vcmp.gt.f32.partialorder %v5351_v31, %v3496_v42 }
 0x2e2   : > { %2459 = vmatmul.mubr.msk.bf16.gmra.mrb[36].mxu1 %vm2457_vm2, %v2458_v6  ;;  %vm5338_vm2 = vcmp.gt.f32.partialorder %v5336_v20, %v3496_v42 }
 0x2e3   : > { %2462 = vmatprep.mubr.msk.bf16.mxu1 %vm2460_vm6, %v2461_v9  ;;  %vm2472_vm4 = vmpackc.low %vm5338_vm2, %vm5337_vm0  ;;  %vm5342_vm6 = vcmp.gt.f32.partialorder %v5340_v23, %v3493_v40  ;;  %vm5357_vm2 = vcmp.gt.f32.partialorder %v5355_v50, %v3493_v40  ;;  %v1313_v23 = vld [vmem:[%s4142_s6 + $0x80] sm:$0xff] }
 0x2e4   : > { %vm2475_vm7 = vmpackc.low %vm5342_vm6, %vm5341_vm5 }
 0x2e5   : > { %vm2490_vm6 = vmpackc.low %vm1100_vm12, %vm1098_vm15 }
 0x2ea   : > { %2465 = vmatmul.mubr.msk.bf16.gmra.mrb[40].mxu1 %vm2463_vm9, %v2464_v12  ;;  %vm5346_vm9 = vcmp.gt.f32.partialorder %v5344_v26, %v3496_v42  ;;  %v1310_v12 = vld [vmem:[%s4142_s6 + $0x68] sm:$0xff]  ;;  %v1315_v26 = vld [vmem:[%s4142_s6 + $0x90] sm:$0xff] }
 0x2eb   : > { %2468 = vmatprep.mubr.msk.bf16.mxu1 %vm2466_vm13, %v2467_v15  ;;  %vm2478_vm10 = vmpackc.low %vm5346_vm9, %vm5345_vm8  ;;  %vm5350_vm13 = vcmp.gt.f32.partialorder %v5348_v29, %v3493_v40  ;;  %vm5360_vm8 = vcmp.gt.f32.partialorder %v4109_v36, %v3493_v40  ;;  %v1316_v29 = vld [vmem:[%s4142_s6 + $0x98] sm:$0xff] }
 0x2ec   : > { %vm2481_vm14 = vmpackc.low %vm5350_vm13, %vm5349_vm11 }
 0x2f2   : > { %2471 = vmatmul.mubr.msk.bf16.gmra.mrb[44].mxu1 %vm2469_vm3, %v2470_v18  ;;  %vm5354_vm3 = vcmp.gt.f32.partialorder %v5352_v43, %v3496_v42  ;;  %v1298_v42 = vld [vmem:[%s4142_s6 + $0x8] sm:$0xff] }
 0x2f3   : > { %2474 = vmatprep.mubr.msk.bf16.mxu1 %vm2472_vm4, %v2473_v21  ;;  %vm2484_vm0 = vmpackc.low %vm5354_vm3, %vm5353_vm1  ;;  %vm5358_vm4 = vcmp.gt.f32.partialorder %v5356_v55, %v3493_v40  ;;  %v1317_v55 = vld [vmem:[%s4142_s6 + $0xa0] sm:$0xff] }
 0x2f4   : > { %vm2487_vm5 = vmpackc.low %vm5358_vm4, %vm5357_vm2 }
 0x2fa   : > { %2477 = vmatmul.mubr.msk.bf16.gmra.mrb[48].mxu1 %vm2475_vm7, %v2476_v24  ;;  %vm5359_vm7 = vcmp.gt.f32.partialorder %v4101_v41, %v3493_v40  ;;  %v1314_v24 = vld [vmem:[%s4142_s6 + $0x88] sm:$0xff] }
 0x2fb   : > { %2480 = vmatprep.mubr.msk.bf16.mxu1 %vm2478_vm10, %v2479_v27  ;;  %vm2493_vm9 = vmpackc.low %vm5360_vm8, %vm5359_vm7 }
 0x302   : > { %2483 = vmatmul.mubr.msk.bf16.gmra.mrb[52].mxu1 %vm2481_vm14, %v2482_v30 }
 0x303   : > { %2486 = vmatprep.mubr.msk.bf16.mxu1 %vm2484_vm0, %v2485_v47 }
 0x30a   : > { %2489 = vmatmul.mubr.msk.bf16.gmra.mrb[56].mxu1 %vm2487_vm5, %v2488_v57  ;;  %v1318_v57 = vld [vmem:[%s4142_s6 + $0xa8] sm:$0xff] }
 0x30b   : > { %2492 = vmatprep.mubr.msk.bf16.mxu1 %vm2490_vm6, %v2491_v59 }
 0x312   : > { %2495 = vmatmul.mubr.msk.bf16.gmra.mrb[60].mxu1 %vm2493_vm9, %v2494_v62  ;;  %v1319_v62 = vld [vmem:[%s4142_s6 + $0xb0] sm:$0xff] }
 0x36d   : > { %v1587_v32 = vpop.f32.mrb[0].mxu1 }
 0x36e   : > { %v1746_v44 = vadd.f32 %v1587_v32, %v1297_v54  ;;  %v1589_v48 = vpop.f32.mrb[1].mxu1  ;;  %v1320_v32 = vld [vmem:[%s4142_s6 + $0xb8] sm:$0xff] }
 0x36f   : > { %v1747_v60 = vadd.f32 %v1589_v48, %v1298_v42  ;;  %v1591_v41 = vpop.f32.mrb[2].mxu1 }
 0x370   : > { %1810 = vst [vmem:[%s4142_s6] sm:$0xff] %v1746_v44  ;;  %v1748_v40 = vadd.f32 %v1591_v41, %v1299_v37  ;;  %v1593_v36 = vpop.f32.mrb[3].mxu1  ;;  %v1321_v41 = vld [vmem:[%s4142_s6 + $0xc0] sm:$0xff] }
 0x371   : > { %1811 = vst [vmem:[%s4142_s6 + $0x8] sm:$0xff] %v1747_v60  ;;  %v1749_v63 = vadd.f32 %v1593_v36, %v1300_v52 }
 0x372   : > { %1812 = vst [vmem:[%s4142_s6 + $0x10] sm:$0xff] %v1748_v40  ;;  %v1322_v40 = vld [vmem:[%s4142_s6 + $0xc8] sm:$0xff] }
 0x373   : > { %1813 = vst [vmem:[%s4142_s6 + $0x18] sm:$0xff] %v1749_v63  ;;  %v1323_v63 = vld [vmem:[%s4142_s6 + $0xd0] sm:$0xff] }
 0x375   : > { %v1597_v56 = vpop.f32.mrb[4].mxu1 }
 0x376   : > { %v1750_v35 = vadd.f32 %v1597_v56, %v1301_v33  ;;  %v1599_v51 = vpop.f32.mrb[5].mxu1  ;;  %v1324_v56 = vld [vmem:[%s4142_s6 + $0xd8] sm:$0xff] }
 0x377   : > { %v1751_v58 = vadd.f32 %v1599_v51, %v1302_v46  ;;  %v1601_v49 = vpop.f32.mrb[6].mxu1 }
 0x378   : > { %1814 = vst [vmem:[%s4142_s6 + $0x20] sm:$0xff] %v1750_v35  ;;  %v1752_v38 = vadd.f32 %v1601_v49, %v1303_v61  ;;  %v1603_v39 = vpop.f32.mrb[7].mxu1  ;;  %v1325_v49 = vld [vmem:[%s4142_s6 + $0xe0] sm:$0xff] }
 0x379   : > { %1815 = vst [vmem:[%s4142_s6 + $0x28] sm:$0xff] %v1751_v58  ;;  %v1753_v53 = vadd.f32 %v1603_v39, %v1304_v34 }
 0x37a   : > { %1816 = vst [vmem:[%s4142_s6 + $0x30] sm:$0xff] %v1752_v38  ;;  %v1326_v38 = vld [vmem:[%s4142_s6 + $0xe8] sm:$0xff] }
 0x37b   : > { %1817 = vst [vmem:[%s4142_s6 + $0x38] sm:$0xff] %v1753_v53  ;;  %v1327_v53 = vld [vmem:[%s4142_s6 + $0xf0] sm:$0xff] }
 0x37d   : > { %v1607_v2 = vpop.f32.mrb[8].mxu1 }
 0x37e   : > { %v1754_v4 = vadd.f32 %v1607_v2, %v1305_v0  ;;  %v1609_v5 = vpop.f32.mrb[9].mxu1  ;;  %v1328_v2 = vld [vmem:[%s4142_s6 + $0xf8] sm:$0xff] }
 0x37f   : > { %v1755_v6 = vadd.f32 %v1609_v5, %v1306_v1  ;;  %v1611_v7 = vpop.f32.mrb[10].mxu1 }
 0x380   : > { %1818 = vst [vmem:[%s4142_s6 + $0x40] sm:$0xff] %v1754_v4  ;;  %v1756_v8 = vadd.f32 %v1611_v7, %v1307_v3  ;;  %v1613_v9 = vpop.f32.mrb[11].mxu1  ;;  %v1329_v7 = vld [vmem:[%s4142_s6 + $0x100] sm:$0xff] }
 0x381   : > { %1819 = vst [vmem:[%s4142_s6 + $0x48] sm:$0xff] %v1755_v6  ;;  %v1757_v10 = vadd.f32 %v1613_v9, %v1308_v45 }
 0x382   : > { %1820 = vst [vmem:[%s4142_s6 + $0x50] sm:$0xff] %v1756_v8  ;;  %v1330_v8 = vld [vmem:[%s4142_s6 + $0x108] sm:$0xff] }
 0x383   : > { %1821 = vst [vmem:[%s4142_s6 + $0x58] sm:$0xff] %v1757_v10  ;;  %v1331_v10 = vld [vmem:[%s4142_s6 + $0x110] sm:$0xff] }
 0x385   : > { %v1617_v13 = vpop.f32.mrb[12].mxu1 }
 0x386   : > { %v1758_v15 = vadd.f32 %v1617_v13, %v1309_v11  ;;  %v1619_v16 = vpop.f32.mrb[13].mxu1  ;;  %v1332_v13 = vld [vmem:[%s4142_s6 + $0x118] sm:$0xff] }
 0x387   : > { %v1759_v18 = vadd.f32 %v1619_v16, %v1310_v12  ;;  %v1621_v19 = vpop.f32.mrb[14].mxu1 }
 0x388   : > { %1822 = vst [vmem:[%s4142_s6 + $0x60] sm:$0xff] %v1758_v15  ;;  %v1760_v20 = vadd.f32 %v1621_v19, %v1311_v14  ;;  %v1623_v21 = vpop.f32.mrb[15].mxu1  ;;  %v1333_v19 = vld [vmem:[%s4142_s6 + $0x120] sm:$0xff] }
 0x389   : > { %1823 = vst [vmem:[%s4142_s6 + $0x68] sm:$0xff] %v1759_v18  ;;  %v1761_v22 = vadd.f32 %v1623_v21, %v1312_v17 }
 0x38a   : > { %1824 = vst [vmem:[%s4142_s6 + $0x70] sm:$0xff] %v1760_v20  ;;  %v1334_v20 = vld [vmem:[%s4142_s6 + $0x128] sm:$0xff] }
 0x38b   : > { %1825 = vst [vmem:[%s4142_s6 + $0x78] sm:$0xff] %v1761_v22  ;;  %v1335_v22 = vld [vmem:[%s4142_s6 + $0x130] sm:$0xff] }
 0x38d   : > { %v1627_v25 = vpop.f32.mrb[16].mxu1 }
 0x38e   : > { %v1762_v27 = vadd.f32 %v1627_v25, %v1313_v23  ;;  %v1629_v28 = vpop.f32.mrb[17].mxu1  ;;  %v1336_v25 = vld [vmem:[%s4142_s6 + $0x138] sm:$0xff] }
 0x38f   : > { %v1763_v30 = vadd.f32 %v1629_v28, %v1314_v24  ;;  %v1631_v31 = vpop.f32.mrb[18].mxu1 }
 0x390   : > { %1826 = vst [vmem:[%s4142_s6 + $0x80] sm:$0xff] %v1762_v27  ;;  %v1764_v43 = vadd.f32 %v1631_v31, %v1315_v26  ;;  %v1633_v47 = vpop.f32.mrb[19].mxu1  ;;  %v1337_v31 = vld [vmem:[%s4142_s6 + $0x140] sm:$0xff] }
 0x391   : > { %1827 = vst [vmem:[%s4142_s6 + $0x88] sm:$0xff] %v1763_v30  ;;  %v1765_v50 = vadd.f32 %v1633_v47, %v1316_v29 }
 0x392   : > { %1828 = vst [vmem:[%s4142_s6 + $0x90] sm:$0xff] %v1764_v43  ;;  %v1338_v43 = vld [vmem:[%s4142_s6 + $0x148] sm:$0xff] }
 0x393   : > { %1829 = vst [vmem:[%s4142_s6 + $0x98] sm:$0xff] %v1765_v50  ;;  %v1339_v50 = vld [vmem:[%s4142_s6 + $0x150] sm:$0xff] }
 0x395   : > { %v1637_v59 = vpop.f32.mrb[20].mxu1 }
 0x396   : > { %v1766_v54 = vadd.f32 %v1637_v59, %v1317_v55  ;;  %v1639_v42 = vpop.f32.mrb[21].mxu1  ;;  %v1340_v59 = vld [vmem:[%s4142_s6 + $0x158] sm:$0xff] }
 0x397   : > { %v1767_v37 = vadd.f32 %v1639_v42, %v1318_v57  ;;  %v1641_v44 = vpop.f32.mrb[22].mxu1 }
 0x398   : > { %1830 = vst [vmem:[%s4142_s6 + $0xa0] sm:$0xff] %v1766_v54  ;;  %v1768_v48 = vadd.f32 %v1641_v44, %v1319_v62  ;;  %v1643_v52 = vpop.f32.mrb[23].mxu1  ;;  %v1341_v44 = vld [vmem:[%s4142_s6 + $0x160] sm:$0xff] }
 0x399   : > { %1831 = vst [vmem:[%s4142_s6 + $0xa8] sm:$0xff] %v1767_v37  ;;  %v1769_v60 = vadd.f32 %v1643_v52, %v1320_v32 }
 0x39a   : > { %1832 = vst [vmem:[%s4142_s6 + $0xb0] sm:$0xff] %v1768_v48  ;;  %v1342_v48 = vld [vmem:[%s4142_s6 + $0x168] sm:$0xff] }
 0x39b   : > { %1833 = vst [vmem:[%s4142_s6 + $0xb8] sm:$0xff] %v1769_v60  ;;  %v1343_v60 = vld [vmem:[%s4142_s6 + $0x170] sm:$0xff] }
 0x39d   : > { %v1647_v36 = vpop.f32.mrb[24].mxu1 }
 0x39e   : > { %v1770_v33 = vadd.f32 %v1647_v36, %v1321_v41  ;;  %v1649_v46 = vpop.f32.mrb[25].mxu1  ;;  %v1344_v36 = vld [vmem:[%s4142_s6 + $0x178] sm:$0xff] }
 0x39f   : > { %v1771_v61 = vadd.f32 %v1649_v46, %v1322_v40  ;;  %v1651_v35 = vpop.f32.mrb[26].mxu1 }
 0x3a0   : > { %1834 = vst [vmem:[%s4142_s6 + $0xc0] sm:$0xff] %v1770_v33  ;;  %v1772_v51 = vadd.f32 %v1651_v35, %v1323_v63  ;;  %v1653_v34 = vpop.f32.mrb[27].mxu1  ;;  %v1345_v35 = vld [vmem:[%s4142_s6 + $0x180] sm:$0xff] }
 0x3a1   : > { %1835 = vst [vmem:[%s4142_s6 + $0xc8] sm:$0xff] %v1771_v61  ;;  %v1773_v58 = vadd.f32 %v1653_v34, %v1324_v56 }
 0x3a2   : > { %1836 = vst [vmem:[%s4142_s6 + $0xd0] sm:$0xff] %v1772_v51  ;;  %v1346_v51 = vld [vmem:[%s4142_s6 + $0x188] sm:$0xff] }
 0x3a3   : > { %1837 = vst [vmem:[%s4142_s6 + $0xd8] sm:$0xff] %v1773_v58  ;;  %v1347_v58 = vld [vmem:[%s4142_s6 + $0x190] sm:$0xff] }
 0x3a5   : > { %v1657_v39 = vpop.f32.mrb[28].mxu1 }
 0x3a6   : > { %v1774_v0 = vadd.f32 %v1657_v39, %v1325_v49  ;;  %v1659_v1 = vpop.f32.mrb[29].mxu1  ;;  %v1348_v39 = vld [vmem:[%s4142_s6 + $0x198] sm:$0xff] }
 0x3a7   : > { %v1775_v3 = vadd.f32 %v1659_v1, %v1326_v38  ;;  %v1661_v4 = vpop.f32.mrb[30].mxu1 }
 0x3a8   : > { %1838 = vst [vmem:[%s4142_s6 + $0xe0] sm:$0xff] %v1774_v0  ;;  %v1776_v5 = vadd.f32 %v1661_v4, %v1327_v53  ;;  %v1663_v45 = vpop.f32.mrb[31].mxu1  ;;  %v1349_v4 = vld [vmem:[%s4142_s6 + $0x1a0] sm:$0xff] }
 0x3a9   : > { %1839 = vst [vmem:[%s4142_s6 + $0xe8] sm:$0xff] %v1775_v3  ;;  %v1777_v6 = vadd.f32 %v1663_v45, %v1328_v2 }
 0x3aa   : > { %1840 = vst [vmem:[%s4142_s6 + $0xf0] sm:$0xff] %v1776_v5  ;;  %v1350_v5 = vld [vmem:[%s4142_s6 + $0x1a8] sm:$0xff] }
 0x3ab   : > { %1841 = vst [vmem:[%s4142_s6 + $0xf8] sm:$0xff] %v1777_v6  ;;  %v1351_v6 = vld [vmem:[%s4142_s6 + $0x1b0] sm:$0xff] }
 0x3ad   : > { %v1667_v9 = vpop.f32.mrb[32].mxu1 }
 0x3ae   : > { %v1778_v11 = vadd.f32 %v1667_v9, %v1329_v7  ;;  %v1669_v12 = vpop.f32.mrb[33].mxu1  ;;  %v1352_v9 = vld [vmem:[%s4142_s6 + $0x1b8] sm:$0xff] }
 0x3af   : > { %v1779_v14 = vadd.f32 %v1669_v12, %v1330_v8  ;;  %v1671_v15 = vpop.f32.mrb[34].mxu1 }
 0x3b0   : > { %1842 = vst [vmem:[%s4142_s6 + $0x100] sm:$0xff] %v1778_v11  ;;  %v1780_v16 = vadd.f32 %v1671_v15, %v1331_v10  ;;  %v1673_v17 = vpop.f32.mrb[35].mxu1  ;;  %v1353_v15 = vld [vmem:[%s4142_s6 + $0x1c0] sm:$0xff] }
 0x3b1   : > { %1843 = vst [vmem:[%s4142_s6 + $0x108] sm:$0xff] %v1779_v14  ;;  %v1781_v18 = vadd.f32 %v1673_v17, %v1332_v13 }
 0x3b2   : > { %1844 = vst [vmem:[%s4142_s6 + $0x110] sm:$0xff] %v1780_v16  ;;  %v1354_v16 = vld [vmem:[%s4142_s6 + $0x1c8] sm:$0xff] }
 0x3b3   : > { %1845 = vst [vmem:[%s4142_s6 + $0x118] sm:$0xff] %v1781_v18  ;;  %v1355_v18 = vld [vmem:[%s4142_s6 + $0x1d0] sm:$0xff] }
 0x3b5   : > { %v1677_v21 = vpop.f32.mrb[36].mxu1 }
 0x3b6   : > { %v1782_v23 = vadd.f32 %v1677_v21, %v1333_v19  ;;  %v1679_v24 = vpop.f32.mrb[37].mxu1  ;;  %v1356_v21 = vld [vmem:[%s4142_s6 + $0x1d8] sm:$0xff] }
 0x3b7   : > { %v1783_v26 = vadd.f32 %v1679_v24, %v1334_v20  ;;  %v1681_v27 = vpop.f32.mrb[38].mxu1 }
 0x3b8   : > { %1846 = vst [vmem:[%s4142_s6 + $0x120] sm:$0xff] %v1782_v23  ;;  %v1784_v28 = vadd.f32 %v1681_v27, %v1335_v22  ;;  %v1683_v29 = vpop.f32.mrb[39].mxu1  ;;  %v1357_v27 = vld [vmem:[%s4142_s6 + $0x1e0] sm:$0xff] }
 0x3b9   : > { %1847 = vst [vmem:[%s4142_s6 + $0x128] sm:$0xff] %v1783_v26  ;;  %v1785_v30 = vadd.f32 %v1683_v29, %v1336_v25 }
 0x3ba   : > { %1848 = vst [vmem:[%s4142_s6 + $0x130] sm:$0xff] %v1784_v28  ;;  %v1358_v28 = vld [vmem:[%s4142_s6 + $0x1e8] sm:$0xff] }
 0x3bb   : > { %1849 = vst [vmem:[%s4142_s6 + $0x138] sm:$0xff] %v1785_v30  ;;  %v1359_v30 = vld [vmem:[%s4142_s6 + $0x1f0] sm:$0xff] }
 0x3bd   : > { %v1687_v47 = vpop.f32.mrb[40].mxu1 }
 0x3be   : > { %v1786_v55 = vadd.f32 %v1687_v47, %v1337_v31  ;;  %v1689_v57 = vpop.f32.mrb[41].mxu1  ;;  %v1360_v47 = vld [vmem:[%s4142_s6 + $0x1f8] sm:$0xff] }
 0x3bf   : > { %v1787_v62 = vadd.f32 %v1689_v57, %v1338_v43  ;;  %v1691_v54 = vpop.f32.mrb[42].mxu1 }
 0x3c0   : > { %1850 = vst [vmem:[%s4142_s6 + $0x140] sm:$0xff] %v1786_v55  ;;  %v1788_v42 = vadd.f32 %v1691_v54, %v1339_v50  ;;  %v1693_v32 = vpop.f32.mrb[43].mxu1  ;;  %v1878_v54 = vld [vmem:[%s4142_s6] sm:$0xff] (!%p2496_p10) }
 0x3c1   : > { %1851 = vst [vmem:[%s4142_s6 + $0x148] sm:$0xff] %v1787_v62  ;;  %v1789_v37 = vadd.f32 %v1693_v32, %v1340_v59  ;;  %v1879_v32 = vld [vmem:[%s4142_s6 + $0x8] sm:$0xff] (!%p2496_p10) }
 0x3c2   : > { %1852 = vst [vmem:[%s4142_s6 + $0x150] sm:$0xff] %v1788_v42  ;;  %v1942_v42 = vld [vmem:[%s5361_s7] sm:$0x3] (!%p2496_p10) }
 0x3c3   : > { %1853 = vst [vmem:[%s4142_s6 + $0x158] sm:$0xff] %v1789_v37  ;;  %v5362_v37 = vld [vmem:[#allocation23_spill] sm:$0xff] (!%p2496_p10) }
 0x3c5   : > { %v1697_v52 = vpop.f32.mrb[44].mxu1 }
 0x3c6   : > { %v1790_v41 = vadd.f32 %v1697_v52, %v1341_v44  ;;  %v1699_v40 = vpop.f32.mrb[45].mxu1  ;;  %v4728_v44 = vrot.slane (!%p2496_p10), %v1942_v42, %v5362_v37 }
 0x3c7   : > { %v1791_v63 = vadd.f32 %v1699_v40, %v1342_v48  ;;  %v1701_v33 = vpop.f32.mrb[46].mxu1  ;;  %v5363_v48 = vld [vmem:[#allocation24_spill] sm:$0xff] (!%p2496_p10)  ;;  %v1882_v40 = vld [vmem:[%s4142_s6 + $0x20] sm:$0xff] (!%p2496_p10) }
 0x3c8   : > { %1854 = vst [vmem:[%s4142_s6 + $0x160] sm:$0xff] %v1790_v41  ;;  %v1792_v46 = vadd.f32 %v1701_v33, %v1343_v60  ;;  %v1703_v56 = vpop.f32.mrb[47].mxu1  ;;  %v4731_v52 = vrot.slane (!%p2496_p10), %v1942_v42, %v5363_v48  ;;  %v1880_v60 = vld [vmem:[%s4142_s6 + $0x10] sm:$0xff] (!%p2496_p10)  ;;  %v1881_v41 = vld [vmem:[%s4142_s6 + $0x18] sm:$0xff] (!%p2496_p10) }
 0x3c9   : > { %1855 = vst [vmem:[%s4142_s6 + $0x168] sm:$0xff] %v1791_v63  ;;  %v1793_v61 = vadd.f32 %v1703_v56, %v1344_v36  ;;  %v1883_v36 = vld [vmem:[%s4142_s6 + $0x28] sm:$0xff] (!%p2496_p10)  ;;  %v1884_v63 = vld [vmem:[%s4142_s6 + $0x30] sm:$0xff] (!%p2496_p10)  ;;  %v1885_v33 = vld [vmem:[%s4142_s6 + $0x38] sm:$0xff] (!%p2496_p10) }
 0x3ca   : > { %1856 = vst [vmem:[%s4142_s6 + $0x170] sm:$0xff] %v1792_v46  ;;  %v1954_v46 = vadd.f32 (!%p2496_p10), %v4728_v44, %v1878_v54  ;;  %v1955_v56 = vadd.f32 (!%p2496_p10), %v4731_v52, %v1879_v32  ;;  %v1908_v54 = vld [vmem:[%s4142_s6 + $0xf0] sm:$0xff] (!%p2496_p10)  ;;  %v1909_v42 = vld [vmem:[%s4142_s6 + $0xf8] sm:$0xff] (!%p2496_p10) }
 0x3cb   : > { %1857 = vst [vmem:[%s4142_s6 + $0x178] sm:$0xff] %v1793_v61  ;;  %v1956_v61 = vadd.f32 (!%p2496_p10), %v4728_v44, %v1880_v60  ;;  %v1984_v37 = vadd.f32 (!%p2496_p10), %v4728_v44, %v1908_v54  ;;  %v1985_v48 = vadd.f32 (!%p2496_p10), %v4731_v52, %v1909_v42  ;;  %v1910_v60 = vld [vmem:[%s4142_s6 + $0x100] sm:$0xff] (!%p2496_p10) }
 0x3cc   : > { %2018 = vst [vmem:[%s4142_s6] sm:$0xff] (!%p2496_p10), %v1954_v46  ;;  %2019 = vst [vmem:[%s4142_s6 + $0x8] sm:$0xff] (!%p2496_p10), %v1955_v56  ;;  %v1913_v46 = vld [vmem:[%s4142_s6 + $0x118] sm:$0xff] (!%p2496_p10)  ;;  %v1914_v56 = vld [vmem:[%s4142_s6 + $0x120] sm:$0xff] (!%p2496_p10) }
 0x3cd   : > { %v1707_v34 = vpop.f32.mrb[48].mxu1  ;;  %2020 = vst [vmem:[%s4142_s6 + $0x10] sm:$0xff] (!%p2496_p10), %v1956_v61  ;;  %v1915_v61 = vld [vmem:[%s4142_s6 + $0x128] sm:$0xff] (!%p2496_p10)  ;;  %2048 = vst [vmem:[%s4142_s6 + $0xf0] sm:$0xff] (!%p2496_p10), %v1984_v37 }
 0x3ce   : > { %v1794_v49 = vadd.f32 %v1707_v34, %v1345_v35  ;;  %v1709_v38 = vpop.f32.mrb[49].mxu1  ;;  %v1957_v35 = vadd.f32 (!%p2496_p10), %v4731_v52, %v1881_v41  ;;  %v1887_v34 = vld [vmem:[%s4142_s6 + $0x48] sm:$0xff] (!%p2496_p10)  ;;  %2049 = vst [vmem:[%s4142_s6 + $0xf8] sm:$0xff] (!%p2496_p10), %v1985_v48 }
 0x3cf   : > { %v1795_v53 = vadd.f32 %v1709_v38, %v1346_v51  ;;  %v1711_v0 = vpop.f32.mrb[50].mxu1  ;;  %v1886_v51 = vld [vmem:[%s4142_s6 + $0x40] sm:$0xff] (!%p2496_p10)  ;;  %v1959_v38 = vadd.f32 (!%p2496_p10), %v4731_v52, %v1883_v36  ;;  %v1911_v41 = vld [vmem:[%s4142_s6 + $0x108] sm:$0xff] (!%p2496_p10)  ;;  %v1986_v36 = vadd.f32 (!%p2496_p10), %v4728_v44, %v1910_v60 }
 0x3d0   : > { %1858 = vst [vmem:[%s4142_s6 + $0x180] sm:$0xff] %v1794_v49  ;;  %v1796_v1 = vadd.f32 %v1711_v0, %v1347_v58  ;;  %v1713_v2 = vpop.f32.mrb[51].mxu1  ;;  %v1888_v58 = vld [vmem:[%s4142_s6 + $0x50] sm:$0xff] (!%p2496_p10)  ;;  %v1958_v49 = vadd.f32 (!%p2496_p10), %v4728_v44, %v1882_v40  ;;  %v1889_v0 = vld [vmem:[%s4142_s6 + $0x58] sm:$0xff] (!%p2496_p10)  ;;  %2021 = vst [vmem:[%s4142_s6 + $0x18] sm:$0xff] (!%p2496_p10), %v1957_v35  ;;  %v1989_v35 = vadd.f32 (!%p2496_p10), %v4731_v52, %v1913_v46 }
 0x3d1   : > { %1859 = vst [vmem:[%s4142_s6 + $0x188] sm:$0xff] %v1795_v53  ;;  %v1797_v3 = vadd.f32 %v1713_v2, %v1348_v39  ;;  %v1960_v39 = vadd.f32 (!%p2496_p10), %v4728_v44, %v1884_v63  ;;  %v1961_v53 = vadd.f32 (!%p2496_p10), %v4731_v52, %v1885_v33  ;;  %v1891_v2 = vld [vmem:[%s4142_s6 + $0x68] sm:$0xff] (!%p2496_p10)  ;;  %2023 = vst [vmem:[%s4142_s6 + $0x28] sm:$0xff] (!%p2496_p10), %v1959_v38  ;;  %v1912_v40 = vld [vmem:[%s4142_s6 + $0x110] sm:$0xff] (!%p2496_p10) }
 0x3d2   : > { %1860 = vst [vmem:[%s4142_s6 + $0x190] sm:$0xff] %v1796_v1  ;;  %v1890_v1 = vld [vmem:[%s4142_s6 + $0x60] sm:$0xff] (!%p2496_p10)  ;;  %2022 = vst [vmem:[%s4142_s6 + $0x20] sm:$0xff] (!%p2496_p10), %v1958_v49  ;;  %v1987_v63 = vadd.f32 (!%p2496_p10), %v4731_v52, %v1911_v41  ;;  %v1988_v33 = vadd.f32 (!%p2496_p10), %v4728_v44, %v1912_v40  ;;  %v1917_v49 = vld [vmem:[%s4142_s6 + $0x138] sm:$0xff] (!%p2496_p10) }
 0x3d3   : > { %1861 = vst [vmem:[%s4142_s6 + $0x198] sm:$0xff] %v1797_v3  ;;  %v1962_v3 = vadd.f32 (!%p2496_p10), %v4728_v44, %v1886_v51  ;;  %2024 = vst [vmem:[%s4142_s6 + $0x30] sm:$0xff] (!%p2496_p10), %v1960_v39  ;;  %v1990_v51 = vadd.f32 (!%p2496_p10), %v4728_v44, %v1914_v56  ;;  %v1918_v38 = vld [vmem:[%s4142_s6 + $0x140] sm:$0xff] (!%p2496_p10) }
 0x3d4   : > { %2025 = vst [vmem:[%s4142_s6 + $0x38] sm:$0xff] (!%p2496_p10), %v1961_v53  ;;  %2050 = vst [vmem:[%s4142_s6 + $0x100] sm:$0xff] (!%p2496_p10), %v1986_v36  ;;  %v1993_v53 = vadd.f32 (!%p2496_p10), %v4731_v52, %v1917_v49 }
 0x3d5   : > { %v1717_v45 = vpop.f32.mrb[52].mxu1  ;;  %2026 = vst [vmem:[%s4142_s6 + $0x40] sm:$0xff] (!%p2496_p10), %v1962_v3  ;;  %2051 = vst [vmem:[%s4142_s6 + $0x108] sm:$0xff] (!%p2496_p10), %v1987_v63  ;;  %v1921_v3 = vld [vmem:[%s4142_s6 + $0x158] sm:$0xff] (!%p2496_p10) }
 0x3d6   : > { %v1798_v7 = vadd.f32 %v1717_v45, %v1349_v4  ;;  %v1719_v8 = vpop.f32.mrb[53].mxu1  ;;  %v1963_v4 = vadd.f32 (!%p2496_p10), %v4731_v52, %v1887_v34  ;;  %v1965_v45 = vadd.f32 (!%p2496_p10), %v4731_v52, %v1889_v0  ;;  %v1991_v34 = vadd.f32 (!%p2496_p10), %v4731_v52, %v1915_v61  ;;  %2052 = vst [vmem:[%s4142_s6 + $0x110] sm:$0xff] (!%p2496_p10), %v1988_v33 }
 0x3d7   : > { %v1799_v10 = vadd.f32 %v1719_v8, %v1350_v5  ;;  %v1721_v11 = vpop.f32.mrb[54].mxu1  ;;  %v1964_v5 = vadd.f32 (!%p2496_p10), %v4728_v44, %v1888_v58  ;;  %v1894_v8 = vld [vmem:[%s4142_s6 + $0x80] sm:$0xff] (!%p2496_p10)  ;;  %v1916_v58 = vld [vmem:[%s4142_s6 + $0x130] sm:$0xff] (!%p2496_p10)  ;;  %v1994_v0 = vadd.f32 (!%p2496_p10), %v4728_v44, %v1918_v38  ;;  %2053 = vst [vmem:[%s4142_s6 + $0x118] sm:$0xff] (!%p2496_p10), %v1989_v35  ;;  %2054 = vst [vmem:[%s4142_s6 + $0x120] sm:$0xff] (!%p2496_p10), %v1990_v51 }
 0x3d8   : > { %1862 = vst [vmem:[%s4142_s6 + $0x1a0] sm:$0xff] %v1798_v7  ;;  %v1800_v12 = vadd.f32 %v1721_v11, %v1351_v6  ;;  %v1723_v13 = vpop.f32.mrb[55].mxu1  ;;  %v1892_v6 = vld [vmem:[%s4142_s6 + $0x70] sm:$0xff] (!%p2496_p10)  ;;  %v1893_v7 = vld [vmem:[%s4142_s6 + $0x78] sm:$0xff] (!%p2496_p10)  ;;  %2027 = vst [vmem:[%s4142_s6 + $0x48] sm:$0xff] (!%p2496_p10), %v1963_v4  ;;  %v1992_v39 = vadd.f32 (!%p2496_p10), %v4728_v44, %v1916_v58 }
 0x3d9   : > { %1863 = vst [vmem:[%s4142_s6 + $0x1a8] sm:$0xff] %v1799_v10  ;;  %v1801_v14 = vadd.f32 %v1723_v13, %v1352_v9  ;;  %v1966_v9 = vadd.f32 (!%p2496_p10), %v4728_v44, %v1890_v1  ;;  %v1967_v10 = vadd.f32 (!%p2496_p10), %v4731_v52, %v1891_v2  ;;  %v1968_v11 = vadd.f32 (!%p2496_p10), %v4728_v44, %v1892_v6  ;;  %v1895_v13 = vld [vmem:[%s4142_s6 + $0x88] sm:$0xff] (!%p2496_p10)  ;;  %v1920_v2 = vld [vmem:[%s4142_s6 + $0x150] sm:$0xff] (!%p2496_p10)  ;;  %v1922_v6 = vld [vmem:[%s4142_s6 + $0x160] sm:$0xff] (!%p2496_p10) }
 0x3da   : > { %1864 = vst [vmem:[%s4142_s6 + $0x1b0] sm:$0xff] %v1800_v12  ;;  %v1969_v12 = vadd.f32 (!%p2496_p10), %v4731_v52, %v1893_v7  ;;  %2028 = vst [vmem:[%s4142_s6 + $0x50] sm:$0xff] (!%p2496_p10), %v1964_v5  ;;  %v1919_v1 = vld [vmem:[%s4142_s6 + $0x148] sm:$0xff] (!%p2496_p10)  ;;  %v1996_v5 = vadd.f32 (!%p2496_p10), %v4728_v44, %v1920_v2 }
 0x3db   : > { %1865 = vst [vmem:[%s4142_s6 + $0x1b8] sm:$0xff] %v1801_v14  ;;  %v1896_v14 = vld [vmem:[%s4142_s6 + $0x90] sm:$0xff] (!%p2496_p10)  ;;  %2029 = vst [vmem:[%s4142_s6 + $0x58] sm:$0xff] (!%p2496_p10), %v1965_v45  ;;  %v1995_v4 = vadd.f32 (!%p2496_p10), %v4731_v52, %v1919_v1  ;;  %v1997_v45 = vadd.f32 (!%p2496_p10), %v4731_v52, %v1921_v3  ;;  %v1923_v7 = vld [vmem:[%s4142_s6 + $0x168] sm:$0xff] (!%p2496_p10) }
 0x3dc   : > { %2030 = vst [vmem:[%s4142_s6 + $0x60] sm:$0xff] (!%p2496_p10), %v1966_v9  ;;  %2031 = vst [vmem:[%s4142_s6 + $0x68] sm:$0xff] (!%p2496_p10), %v1967_v10  ;;  %v1998_v9 = vadd.f32 (!%p2496_p10), %v4728_v44, %v1922_v6  ;;  %v1999_v10 = vadd.f32 (!%p2496_p10), %v4731_v52, %v1923_v7 }
 0x3dd   : > { %v1727_v17 = vpop.f32.mrb[56].mxu1  ;;  %2032 = vst [vmem:[%s4142_s6 + $0x70] sm:$0xff] (!%p2496_p10), %v1968_v11  ;;  %2033 = vst [vmem:[%s4142_s6 + $0x78] sm:$0xff] (!%p2496_p10), %v1969_v12  ;;  %v1925_v12 = vld [vmem:[%s4142_s6 + $0x178] sm:$0xff] (!%p2496_p10) }
 0x3de   : > { %v1802_v19 = vadd.f32 %v1727_v17, %v1353_v15  ;;  %v1729_v20 = vpop.f32.mrb[57].mxu1  ;;  %v1897_v15 = vld [vmem:[%s4142_s6 + $0x98] sm:$0xff] (!%p2496_p10)  ;;  %v1971_v17 = vadd.f32 (!%p2496_p10), %v4731_v52, %v1895_v13  ;;  %2055 = vst [vmem:[%s4142_s6 + $0x128] sm:$0xff] (!%p2496_p10), %v1991_v34  ;;  %2056 = vst [vmem:[%s4142_s6 + $0x130] sm:$0xff] (!%p2496_p10), %v1992_v39  ;;  %v1926_v13 = vld [vmem:[%s4142_s6 + $0x180] sm:$0xff] (!%p2496_p10) }
 0x3df   : > { %v1803_v22 = vadd.f32 %v1729_v20, %v1354_v16  ;;  %v1731_v23 = vpop.f32.mrb[58].mxu1  ;;  %v1970_v16 = vadd.f32 (!%p2496_p10), %v4728_v44, %v1894_v8  ;;  %v1898_v20 = vld [vmem:[%s4142_s6 + $0xa0] sm:$0xff] (!%p2496_p10)  ;;  %v1924_v8 = vld [vmem:[%s4142_s6 + $0x170] sm:$0xff] (!%p2496_p10)  ;;  %2057 = vst [vmem:[%s4142_s6 + $0x138] sm:$0xff] (!%p2496_p10), %v1993_v53  ;;  %2058 = vst [vmem:[%s4142_s6 + $0x140] sm:$0xff] (!%p2496_p10), %v1994_v0 }
 0x3e0   : > { %1866 = vst [vmem:[%s4142_s6 + $0x1c0] sm:$0xff] %v1802_v19  ;;  %v1804_v24 = vadd.f32 %v1731_v23, %v1355_v18  ;;  %v1733_v25 = vpop.f32.mrb[59].mxu1  ;;  %v1972_v18 = vadd.f32 (!%p2496_p10), %v4728_v44, %v1896_v14  ;;  %v1973_v19 = vadd.f32 (!%p2496_p10), %v4731_v52, %v1897_v15  ;;  %v1974_v23 = vadd.f32 (!%p2496_p10), %v4728_v44, %v1898_v20  ;;  %v1927_v14 = vld [vmem:[%s4142_s6 + $0x188] sm:$0xff] (!%p2496_p10)  ;;  %v1930_v20 = vld [vmem:[%s4142_s6 + $0x1a0] sm:$0xff] (!%p2496_p10) }
 0x3e1   : > { %1867 = vst [vmem:[%s4142_s6 + $0x1c8] sm:$0xff] %v1803_v22  ;;  %v1805_v26 = vadd.f32 %v1733_v25, %v1356_v21  ;;  %v1899_v21 = vld [vmem:[%s4142_s6 + $0xa8] sm:$0xff] (!%p2496_p10)  ;;  %v1900_v22 = vld [vmem:[%s4142_s6 + $0xb0] sm:$0xff] (!%p2496_p10)  ;;  %2034 = vst [vmem:[%s4142_s6 + $0x80] sm:$0xff] (!%p2496_p10), %v1970_v16  ;;  %v2000_v11 = vadd.f32 (!%p2496_p10), %v4728_v44, %v1924_v8  ;;  %v2001_v15 = vadd.f32 (!%p2496_p10), %v4731_v52, %v1925_v12 }
 0x3e2   : > { %1868 = vst [vmem:[%s4142_s6 + $0x1d0] sm:$0xff] %v1804_v24  ;;  %v1975_v24 = vadd.f32 (!%p2496_p10), %v4731_v52, %v1899_v21  ;;  %v1976_v25 = vadd.f32 (!%p2496_p10), %v4728_v44, %v1900_v22  ;;  %2035 = vst [vmem:[%s4142_s6 + $0x88] sm:$0xff] (!%p2496_p10), %v1971_v17  ;;  %v2002_v16 = vadd.f32 (!%p2496_p10), %v4728_v44, %v1926_v13 }
 0x3e3   : > { %1869 = vst [vmem:[%s4142_s6 + $0x1d8] sm:$0xff] %v1805_v26  ;;  %v1901_v26 = vld [vmem:[%s4142_s6 + $0xb8] sm:$0xff] (!%p2496_p10)  ;;  %2036 = vst [vmem:[%s4142_s6 + $0x90] sm:$0xff] (!%p2496_p10), %v1972_v18  ;;  %v2003_v17 = vadd.f32 (!%p2496_p10), %v4731_v52, %v1927_v14  ;;  %v1928_v18 = vld [vmem:[%s4142_s6 + $0x190] sm:$0xff] (!%p2496_p10) }
 0x3e4   : > { %2037 = vst [vmem:[%s4142_s6 + $0x98] sm:$0xff] (!%p2496_p10), %v1973_v19  ;;  %2038 = vst [vmem:[%s4142_s6 + $0xa0] sm:$0xff] (!%p2496_p10), %v1974_v23  ;;  %v1929_v19 = vld [vmem:[%s4142_s6 + $0x198] sm:$0xff] (!%p2496_p10)  ;;  %v2004_v21 = vadd.f32 (!%p2496_p10), %v4728_v44, %v1928_v18  ;;  %v2006_v23 = vadd.f32 (!%p2496_p10), %v4728_v44, %v1930_v20 }
 0x3e5   : > { %v1737_v29 = vpop.f32.mrb[60].mxu1  ;;  %1877 = sbr.rel (%p2496_p10) target bundleno = 1016 (0x3f8), region = 64  ;;  %2039 = vst [vmem:[%s4142_s6 + $0xa8] sm:$0xff] (!%p2496_p10), %v1975_v24  ;;  %2040 = vst [vmem:[%s4142_s6 + $0xb0] sm:$0xff] (!%p2496_p10), %v1976_v25  ;;  %v2005_v22 = vadd.f32 (!%p2496_p10), %v4731_v52, %v1929_v19  ;;  %v1931_v24 = vld [vmem:[%s4142_s6 + $0x1a8] sm:$0xff] (!%p2496_p10)  ;;  %v1932_v25 = vld [vmem:[%s4142_s6 + $0x1b0] sm:$0xff] (!%p2496_p10) }
 0x3e6   : > { %v1806_v31 = vadd.f32 %v1737_v29, %v1357_v27  ;;  %v1739_v43 = vpop.f32.mrb[61].mxu1  ;;  %v1902_v27 = vld [vmem:[%s4142_s6 + $0xc0] sm:$0xff] (!%p2496_p10)  ;;  %v1977_v29 = vadd.f32 (!%p2496_p10), %v4731_v52, %v1901_v26  ;;  %2059 = vst [vmem:[%s4142_s6 + $0x148] sm:$0xff] (!%p2496_p10), %v1995_v4  ;;  %2060 = vst [vmem:[%s4142_s6 + $0x150] sm:$0xff] (!%p2496_p10), %v1996_v5  ;;  %v1933_v26 = vld [vmem:[%s4142_s6 + $0x1b8] sm:$0xff] (!%p2496_p10) }
 0x3e7   : > { %v1807_v50 = vadd.f32 %v1739_v43, %v1358_v28  ;;  %v1741_v55 = vpop.f32.mrb[62].mxu1  ;;  %v1903_v28 = vld [vmem:[%s4142_s6 + $0xc8] sm:$0xff] (!%p2496_p10)  ;;  %v1904_v43 = vld [vmem:[%s4142_s6 + $0xd0] sm:$0xff] (!%p2496_p10)  ;;  %2061 = vst [vmem:[%s4142_s6 + $0x158] sm:$0xff] (!%p2496_p10), %v1997_v45  ;;  %2062 = vst [vmem:[%s4142_s6 + $0x160] sm:$0xff] (!%p2496_p10), %v1998_v9 }
 0x3e8   : > { %1870 = vst [vmem:[%s4142_s6 + $0x1e0] sm:$0xff] %v1806_v31  ;;  %v1808_v57 = vadd.f32 %v1741_v55, %v1359_v30  ;;  %v1743_v59 = vpop.f32.mrb[63].mxu1  ;;  %v1978_v30 = vadd.f32 (!%p2496_p10), %v4728_v44, %v1902_v27  ;;  %v1979_v31 = vadd.f32 (!%p2496_p10), %v4731_v52, %v1903_v28  ;;  %v1980_v55 = vadd.f32 (!%p2496_p10), %v4728_v44, %v1904_v43 }
 0x3e9   : > { %1871 = vst [vmem:[%s4142_s6 + $0x1e8] sm:$0xff] %v1807_v50  ;;  %v1809_v62 = vadd.f32 %v1743_v59, %v1360_v47  ;;  %v1905_v47 = vld [vmem:[%s4142_s6 + $0xd8] sm:$0xff] (!%p2496_p10)  ;;  %v1906_v50 = vld [vmem:[%s4142_s6 + $0xe0] sm:$0xff] (!%p2496_p10)  ;;  %2041 = vst [vmem:[%s4142_s6 + $0xb8] sm:$0xff] (!%p2496_p10), %v1977_v29  ;;  %v2007_v27 = vadd.f32 (!%p2496_p10), %v4731_v52, %v1931_v24  ;;  %v2008_v28 = vadd.f32 (!%p2496_p10), %v4728_v44, %v1932_v25 }
 0x3ea   : > { %1872 = vst [vmem:[%s4142_s6 + $0x1f0] sm:$0xff] %v1808_v57  ;;  %v1981_v57 = vadd.f32 (!%p2496_p10), %v4731_v52, %v1905_v47  ;;  %v1982_v59 = vadd.f32 (!%p2496_p10), %v4728_v44, %v1906_v50  ;;  %2042 = vst [vmem:[%s4142_s6 + $0xc0] sm:$0xff] (!%p2496_p10), %v1978_v30  ;;  %v2009_v29 = vadd.f32 (!%p2496_p10), %v4731_v52, %v1933_v26  ;;  %v1934_v30 = vld [vmem:[%s4142_s6 + $0x1c0] sm:$0xff] (!%p2496_p10)  ;;  %v1936_v43 = vld [vmem:[%s4142_s6 + $0x1d0] sm:$0xff] (!%p2496_p10) }
 0x3eb   : > { %1873 = vst [vmem:[%s4142_s6 + $0x1f8] sm:$0xff] %v1809_v62  ;;  %v1907_v62 = vld [vmem:[%s4142_s6 + $0xe8] sm:$0xff] (!%p2496_p10)  ;;  %2043 = vst [vmem:[%s4142_s6 + $0xc8] sm:$0xff] (!%p2496_p10), %v1979_v31  ;;  %v2010_v47 = vadd.f32 (!%p2496_p10), %v4728_v44, %v1934_v30 }
 0x3ec   : > { %v1983_v32 = vadd.f32 %v4731_v52, %v1907_v62  ;;  %2044 = vst [vmem:[%s4142_s6 + $0xd0] sm:$0xff] %v1980_v55  ;;  %2045 = vst [vmem:[%s4142_s6 + $0xd8] sm:$0xff] %v1981_v57  ;;  %v1935_v31 = vld [vmem:[%s4142_s6 + $0x1c8] sm:$0xff]  ;;  %v2012_v55 = vadd.f32 %v4728_v44, %v1936_v43  ;;  %v1937_v57 = vld [vmem:[%s4142_s6 + $0x1d8] sm:$0xff] }
 0x3ed   : > { %2046 = vst [vmem:[%s4142_s6 + $0xe0] sm:$0xff] %v1982_v59  ;;  %2063 = vst [vmem:[%s4142_s6 + $0x168] sm:$0xff] %v1999_v10  ;;  %v2011_v50 = vadd.f32 %v4731_v52, %v1935_v31  ;;  %v2013_v54 = vadd.f32 %v4731_v52, %v1937_v57 }
 0x3ee   : > { %2047 = vst [vmem:[%s4142_s6 + $0xe8] sm:$0xff] %v1983_v32  ;;  %2064 = vst [vmem:[%s4142_s6 + $0x170] sm:$0xff] %v2000_v11 }
 0x3ef   : > { %2065 = vst [vmem:[%s4142_s6 + $0x178] sm:$0xff] %v2001_v15  ;;  %2066 = vst [vmem:[%s4142_s6 + $0x180] sm:$0xff] %v2002_v16  ;;  %v1938_v59 = vld [vmem:[%s4142_s6 + $0x1e0] sm:$0xff] }
 0x3f0   : > { %2067 = vst [vmem:[%s4142_s6 + $0x188] sm:$0xff] %v2003_v17  ;;  %2068 = vst [vmem:[%s4142_s6 + $0x190] sm:$0xff] %v2004_v21  ;;  %v1939_v62 = vld [vmem:[%s4142_s6 + $0x1e8] sm:$0xff]  ;;  %v2014_v42 = vadd.f32 %v4728_v44, %v1938_v59 }
 0x3f1   : > { %2069 = vst [vmem:[%s4142_s6 + $0x198] sm:$0xff] %v2005_v22  ;;  %2070 = vst [vmem:[%s4142_s6 + $0x1a0] sm:$0xff] %v2006_v23  ;;  %v2015_v32 = vadd.f32 %v4731_v52, %v1939_v62  ;;  %v1940_v37 = vld [vmem:[%s4142_s6 + $0x1f0] sm:$0xff] }
 0x3f2   : > { %2071 = vst [vmem:[%s4142_s6 + $0x1a8] sm:$0xff] %v2007_v27  ;;  %2072 = vst [vmem:[%s4142_s6 + $0x1b0] sm:$0xff] %v2008_v28  ;;  %v1941_v48 = vld [vmem:[%s4142_s6 + $0x1f8] sm:$0xff]  ;;  %v2016_v60 = vadd.f32 %v4728_v44, %v1940_v37 }
 0x3f3   : > { %2073 = vst [vmem:[%s4142_s6 + $0x1b8] sm:$0xff] %v2009_v29  ;;  %2074 = vst [vmem:[%s4142_s6 + $0x1c0] sm:$0xff] %v2010_v47  ;;  %v2017_v41 = vadd.f32 %v4731_v52, %v1941_v48 }
 0x3f4   : > { %2075 = vst [vmem:[%s4142_s6 + $0x1c8] sm:$0xff] %v2011_v50  ;;  %2076 = vst [vmem:[%s4142_s6 + $0x1d0] sm:$0xff] %v2012_v55 }
 0x3f5   : > { %2077 = vst [vmem:[%s4142_s6 + $0x1d8] sm:$0xff] %v2013_v54  ;;  %2078 = vst [vmem:[%s4142_s6 + $0x1e0] sm:$0xff] %v2014_v42 }
 0x3f6   : > { %2079 = vst [vmem:[%s4142_s6 + $0x1e8] sm:$0xff] %v2015_v32  ;;  %2080 = vst [vmem:[%s4142_s6 + $0x1f0] sm:$0xff] %v2016_v60 }
 0x3f7   : > { %2081 = vst [vmem:[%s4142_s6 + $0x1f8] sm:$0xff] %v2017_v41 }
 0x3f8 PF: > { %s5364_s30 = sld [smem:[#allocation17_spill]]  ;;  %s5365_s20 = sld [smem:[#allocation18_spill]] }
 0x3f9   : > { %s2104_s17 = sshll.u32 %s3518_s21, 4  ;;  %s5366_s19 = sld [smem:[#allocation69_spill]]  ;;  %s4926_s17 = int_to_ptr.vmem [resolvable:$true] %s2104_s17 }
 0x3fa   : > { %s4935_s4 = scalar_lea.sflag [#allocation4], %s370_s22  ;;  %s2832_s12 = scalar_lea.vmem %s4926_s17, 8192 }
 0x3fb   : > { %p2833_p12 = scmp.ne.s32.totalorder %s4926_s17, %s2832_s12 }
 0x3fe   : > { %s2511_s16 = sshll.u32 %s5364_s30, 7  ;;  %p5367_p0 = scmp.ne.s32.totalorder %s5365_s20, 0 }
 0x3ff   : > { %s2101_s23 = sadd.s32 %s2511_s16, %s3469_s14  ;;  %s3000_s14 = smov [#allocation8]  }
 0x400   : > { %s2502_s24 = sshll.u32 %s2101_s23, 7  ;;  %p2834_p8 = pnand %p2833_p12, %p5367_p0 }
 0x401   : > { %s4931_s13 = scalar_lea.hbm %s5366_s19, %s2502_s24  ;;  %s2836_s21 = sshll.u32 %s3000_s14, 4  ;;  %s2837_s21 = int_to_ptr.vmem [resolvable:$false] %s2836_s21 }
 0x402   : > { %p2835_p13 = pneg %p2834_p8  ;;  %s2838_s7 = scalar_lea.vmem %s2837_s21, 16384 }
 0x403   : > { %p2839_p9 = scmp.lt.s32.totalorder %s4926_s17, %s2837_s21  ;;  %p2840_p1 = scmp.lt.s32.totalorder %s2838_s7, %s2832_s12 }
 0x405   : > { %p2841_p3 = por %p2840_p1, %p2839_p9 }
 0x407   : > { %p2842_p11 = pnand %p2841_p3, %p2835_p13 }
 0x409   : > { %2845 = shalt.err (!%p2842_p11)
}
 0x40a   : > { %s2846_s22 = scalar_lea.hbm %s4931_s13, 8192  ;;  %s2850_s24 = scalar_lea.hbm %s5366_s19, 32768 }
 0x40b   : > { %p2847_p5 = scmp.ne.s32.totalorder %s4931_s13, %s2846_s22  ;;  %p2851_p2 = scmp.lt.u32.totalorder %s4931_s13, %s5366_s19 }
 0x40c   : > { %p2852_p10 = scmp.lt.u32.totalorder %s2850_s24, %s2846_s22  ;;  %p2854_p8 = scmp.lt.u32.totalorder %s2846_s22, %s4931_s13 }
 0x40d   : > { %p2848_p6 = pnand %p2847_p5, %p5367_p0 }
 0x40e   : > { %p2853_p12 = por %p2852_p10, %p2851_p2 }
 0x40f   : > { %p2849_p4 = pneg %p2848_p6 }
 0x410   : > { %p2855_p13 = por %p2854_p8, %p2853_p12 }
 0x412   : > { %p2856_p9 = pnand %p2855_p13, %p2849_p4 }
 0x414   : > { %2859 = shalt.err (!%p2856_p9)
}
 0x415   : > { %s3001_s12 = smov 256   ;;  %s3002_s14 = smov 512  }
 0x416   : > { %s3003_s21 = smov 16   ;;  %s2513_s7 = sshll.u32 %s5364_s30, 13 }
 0x417   : > { %2524 = dma.vmem_to_hbm [thread:$0]  (%p5367_p0), %s4926_s17, 8192, %s4931_s13, %s4935_s4, %s3001_s12, %s3002_s14, %s3003_s21  }
 0x418   : > { %s5368_s23 = sld [smem:[#allocation70_spill]]  ;;  %s2121_s1 = sshll.u32 %s4142_s6, 4  ;;  %s4968_s1 = int_to_ptr.vmem [resolvable:$true] %s2121_s1 }
 0x419   : > { %s2088_s8 = scalar_lea.sflag [#allocation10], %s3288_s27  ;;  %s2860_s0 = scalar_lea.vmem %s4968_s1, 8192 }
 0x41a   : > { %p2861_p1 = scmp.ne.s32.totalorder %s4968_s1, %s2860_s0  ;;  %s3004_s20 = smov [#allocation9]  }
 0x41b   : > { %s2864_s17 = sshll.u32 %s3004_s20, 4  ;;  %s2865_s17 = int_to_ptr.vmem [resolvable:$false] %s2864_s17 }
 0x41c   : > { %p2862_p3 = pnand %p2861_p1, %p3216_p7  ;;  %s2866_s30 = scalar_lea.vmem %s2865_s17, 16384 }
 0x41d   : > { %p2867_p0 = scmp.lt.s32.totalorder %s4968_s1, %s2865_s17  ;;  %p2868_p5 = scmp.lt.s32.totalorder %s2866_s30, %s2860_s0 }
 0x41e   : > { %s4965_s24 = scalar_lea.hbm %s5368_s23, %s2513_s7  ;;  %p2863_p11 = pneg %p2862_p3 }
 0x41f   : > { %p2869_p6 = por %p2868_p5, %p2867_p0 }
 0x421   : > { %p2870_p4 = pnand %p2869_p6, %p2863_p11 }
 0x423   : > { %2873 = shalt.err (!%p2870_p4)
}
 0x424   : > { %s2874_s6 = scalar_lea.hbm %s4965_s24, 8192  ;;  %s2878_s14 = scalar_lea.hbm %s5368_s23, 16384 }
 0x425   : > { %p2875_p2 = scmp.ne.s32.totalorder %s4965_s24, %s2874_s6  ;;  %p2879_p8 = scmp.lt.u32.totalorder %s4965_s24, %s5368_s23 }
 0x426   : > { %p2880_p13 = scmp.lt.u32.totalorder %s2878_s14, %s2874_s6  ;;  %p2882_p1 = scmp.lt.u32.totalorder %s2874_s6, %s4965_s24 }
 0x427   : > { %p2876_p10 = pnand %p2875_p2, %p3216_p7 }
 0x428   : > { %p2881_p9 = por %p2880_p13, %p2879_p8 }
 0x429   : > { %p2877_p12 = pneg %p2876_p10 }
 0x42a   : > { %p2883_p3 = por %p2882_p1, %p2881_p9 }
 0x42c   : > { %p2884_p11 = pnand %p2883_p3, %p2877_p12 }
 0x42e   : > { %2887 = shalt.err (!%p2884_p11)
}
 0x42f   : > { %2525 = dma.vmem_to_hbm [thread:$0]  (%p3216_p7), %s4968_s1, 8192, %s4965_s24, %s2088_s8, %s3001_s12, %s3001_s12, %s3003_s21  }
 0x430 PF: > { %s5369_s0 = sld [smem:[#allocation15_spill]]  ;;  %s5370_s16 = sld [smem:[#allocation19_spill]] }
 0x431   : > { %p2551_p0 = scmp.ge.s32.totalorder %s2990_s11, 2 }
 0x436   : > { %s2136_s20 = sand.u32 1, %s5369_s0   ;;  %p5371_p5 = scmp.ne.s32.totalorder %s5370_s16, 0 }
 0x437   : > { %s2137_s17 = scalar_lea.sflag [#allocation4], %s2136_s20 }
 0x438   : > { %p2540_p6 = pnand %p2551_p0, %p5371_p5 }
 0x43a   : > { %2941 = dma.done.wait (!%p2540_p6), %s2137_s17, 8192  }
 0x43b   : > { %2943 = vsyncadd (!%p2540_p6), %s2137_s17, 4294959104  ;;  %s5372_s15 = sld [smem:[#allocation16_spill]]  ;;  %s5373_s30 = sld [smem:[#allocation20_spill]] }
 0x441   : > { %s2145_s6 = sand.u32 1, %s5372_s15   ;;  %p5374_p4 = scmp.ne.s32.totalorder %s5373_s30, 0 }
 0x442   : > { %s2146_s27 = scalar_lea.sflag [#allocation10], %s2145_s6 }
 0x443   : > { %p2543_p2 = pnand %p2551_p0, %p5374_p4 }
 0x445   : > { %2945 = dma.done.wait (!%p2543_p2), %s2146_s27, 8192  }
 0x446   : > { %2947 = vsyncadd (!%p2543_p2), %s2146_s27, 4294959104  ;;  %s28_s11 = sadd.s32 1, %s2990_s11   ;;  %s5375_s12 = sld [smem:[#allocation21_spill]] }
 0x447   : > { %p25_p7 = scmp.ge.s32.totalorder %s28_s11, 6   ;;  %s5376_s21 = sld [smem:[#allocation22_spill]] }
 0x448   : > { %s5377_s24 = smov %s2954_s25  ;;  %s5378_s25 = smov %s2958_s26 }
 0x449   : > { %s5379_s26 = smov %s3237_s5  ;;  %s5380_s27 = smov %s2966_s28 }
 0x44a   : > { %s5381_s28 = smov %s2970_s29  ;;  %s5382_s29 = smov %s3232_s18 }
 0x44b   : > { %s5383_s30 = smov %s2982_s9  ;;  %s5384_s8 = smov %s2986_s10 }
 0x44c   : > { %s5385_s9 = smov %s5375_s12  ;;  %27 = sbr.rel (!%p25_p7) target bundleno = 19 (0x13), region = 130 }
 0x44d   : > { %s5386_s10 = smov %s5376_s21 }
 0x453   :  { %2151 = vsyncpa [#allocation3], 1 }
 0x454   :  { %2153 = vsyncpa [#allocation3 + $0x1], 1 }
 0x455   :  { %2154 = vsyncpa [#allocation6], 1 }
 0x456   :  { %2155 = vsyncpa [#allocation4], 1 }
 0x457   :  { %2157 = vsyncpa [#allocation4 + $0x1], 1 }
 0x458   :  { %2158 = vsyncpa [#allocation10], 1 }
 0x459   :  { %2160 = vsyncpa [#allocation10 + $0x1], 1 }

</bundles_post_ra>
